<compile_context>
chip_gen: v5e
topology: v5e:2x2
jax: 0.10.0
libtpu: 0.0.40
codegen_flags: <defaults>
</compile_context>

<pallas_src>
import numpy as np
import jax
import jax.numpy as jnp
from jax.experimental import pallas as pl
from jax.experimental.pallas import tpu as pltpu


def bilinear_matrix(out_size: int, in_size: int) -> np.ndarray:
    """Row-stochastic interpolation matrix matching torch bilinear, align_corners=False.
    (Only the default, non torch-0.4 branch of the original module is implemented.)"""
    scale = in_size / out_size
    dst = np.arange(out_size, dtype=np.float64)
    src = np.clip((dst + 0.5) * scale - 0.5, 0.0, None)
    i0 = np.minimum(np.floor(src).astype(np.int64), in_size - 1)
    i1 = np.minimum(i0 + 1, in_size - 1)
    lam1 = src - i0
    lam0 = 1.0 - lam1
    w = np.zeros((out_size, in_size), dtype=np.float64)
    np.add.at(w, (np.arange(out_size), i0), lam0)
    np.add.at(w, (np.arange(out_size), i1), lam1)
    return w.astype(np.float32)


def _round_up(x: int, m: int) -> int:
    return (x + m - 1) // m * m


def _divisors_desc(n: int, cap: int):
    return [d for d in range(min(n, cap), 0, -1) if n % d == 0]


def _pick_tiles(nc, ho, wo, hi_p, wi_p, budget_bytes=24 * 1024 * 1024):
    """Pick (planes-per-step B, Ho-rows-per-step tho) under a VMEM block budget.
    Constraints: B | nc, tho | ho, and (tho % 8 == 0 or tho == ho)."""
    row_opts = [d for d in _divisors_desc(ho, ho) if d % 8 == 0 or d == ho]

    def footprint(b, th):
        # double-buffered input blocks + in-kernel temporaries + accs/outs (f32 words)
        inputs = 2 * (b * th * wo) + 4 * (b * hi_p * wi_p) + 2 * th * hi_p + 2 * wi_p * wo
        temps = 2 * (b * th * (hi_p + wi_p + 2 * wo) + th * wo)
        accs = 4 * 8 * wo
        return 4 * (inputs + temps + accs)

    for b in _divisors_desc(nc, 16):
        for th in row_opts:
            if footprint(b, th) <= budget_bytes:
                return b, th
    return 1, row_opts[-1]


def _dsn_fused_kernel(x0_ref, x1_ref, t_ref, wh_ref, wwt_ref,
                      out0_ref, out1_ref, acc0_ref, acc1_ref):
    j = pl.program_id(1)

    @pl.when(j == 0)
    def _():
        acc0_ref[...] = jnp.zeros_like(acc0_ref)
        acc1_ref[...] = jnp.zeros_like(acc1_ref)

    b, hi_p, wi_p = x0_ref.shape
    _, tho, wo = t_ref.shape

    wh_b = jnp.broadcast_to(wh_ref[...][None], (b, tho, hi_p))   # (b, tho, hi_p)
    wwt = wwt_ref[...]                                           # (wi_p, wo)
    y = t_ref[...]                                               # (b, tho, wo)

    def partial_loss_sum(x):
        # H-direction upsample: batched (tho, hi_p) @ (hi_p, wi_p) on the MXU.
        t1 = jnp.einsum("bth,bhw->btw", wh_b, x,
                        preferred_element_type=jnp.float32)       # (b, tho, wi_p)
        # W-direction upsample: one big lane-dense 2-D GEMM on the MXU.
        z = jnp.dot(t1.reshape(b * tho, wi_p), wwt,
                    preferred_element_type=jnp.float32)           # (b*tho, wo)
        z = z.reshape(b, tho, wo)
        # Numerically stable BCE-with-logits (same formula torch uses):
        #   l = max(z, 0) - z*y + log(1 + exp(-|z|))
        loss = jnp.maximum(z, 0.0) - z * y + jnp.log1p(jnp.exp(-jnp.abs(z)))
        # VPU-only partial reduction to an (8, wo) tile (no per-step cross-lane reduce,
        # no serialized scalar read-modify-write).
        part = jnp.sum(loss, axis=0)                              # (tho, wo)
        pad = (-tho) % 8
        if pad:
            part = jnp.concatenate(
                [part, jnp.zeros((pad, wo), part.dtype)], axis=0)
        return jnp.sum(part.reshape(-1, 8, wo), axis=0)           # (8, wo)

    acc0_ref[...] += partial_loss_sum(x0_ref[...])
    acc1_ref[...] += partial_loss_sum(x1_ref[...])

    @pl.when(j == pl.num_programs(1) - 1)
    def _():
        out0_ref[0] = acc0_ref[...]
        out1_ref[0] = acc1_ref[...]


def dsn_loss_sums(pred0, pred1, target):
    """One fused pallas_call. Returns (sum of per-element BCEWithLogits for upsampled
    pred0, same for pred1, element count)."""
    n, c, hi, wi = pred0.shape
    assert pred1.shape == pred0.shape
    nt, ct, ho, wo = target.shape
    assert (n, c) == (nt, ct)
    nc = n * c

    # Pad pred spatial dims to (8, 128) multiples for lane/sublane density; the matching
    # zero rows/cols in the interpolation matrices keep the result exactly unchanged.
    hi_p = _round_up(hi, 8)
    wi_p = _round_up(wi, 128)

    def prep(p):
        x = p.reshape(nc, hi, wi).astype(jnp.float32)
        return jnp.pad(x, ((0, 0), (0, hi_p - hi), (0, wi_p - wi)))

    x0 = prep(pred0)
    x1 = prep(pred1)
    t = target.reshape(nc, ho, wo).astype(jnp.float32)

    wh_np = np.zeros((ho, hi_p), np.float32)
    wh_np[:, :hi] = bilinear_matrix(ho, hi)
    wwt_np = np.zeros((wi_p, wo), np.float32)
    wwt_np[:wi, :] = bilinear_matrix(wo, wi).T
    wh = jnp.asarray(wh_np)     # (Ho, Hi_pad)
    wwt = jnp.asarray(wwt_np)   # (Wi_pad, Wo)

    b_blk, tho = _pick_tiles(nc, ho, wo, hi_p, wi_p)
    num_i, num_j = nc // b_blk, ho // tho

    out0, out1 = pl.pallas_call(
        _dsn_fused_kernel,
        out_shape=(jax.ShapeDtypeStruct((num_i, 8, wo), jnp.float32),
                   jax.ShapeDtypeStruct((num_i, 8, wo), jnp.float32)),
        grid=(num_i, num_j),
        in_specs=[
            pl.BlockSpec((b_blk, hi_p, wi_p), lambda i, j: (i, 0, 0)),  # pred0 planes
            pl.BlockSpec((b_blk, hi_p, wi_p), lambda i, j: (i, 0, 0)),  # pred1 planes
            pl.BlockSpec((b_blk, tho, wo), lambda i, j: (i, j, 0)),     # target tile
            pl.BlockSpec((tho, hi_p), lambda i, j: (j, 0)),             # Wh row tile
            pl.BlockSpec((wi_p, wo), lambda i, j: (0, 0)),              # Ww^T (whole)
        ],
        out_specs=(
            pl.BlockSpec((1, 8, wo), lambda i, j: (i, 0, 0)),
            pl.BlockSpec((1, 8, wo), lambda i, j: (i, 0, 0)),
        ),
        scratch_shapes=[pltpu.VMEM((8, wo), jnp.float32),
                        pltpu.VMEM((8, wo), jnp.float32)],
        compiler_params=pltpu.CompilerParams(
            dimension_semantics=("parallel", "arbitrary"),
            vmem_limit_bytes=48 * 1024 * 1024),
    )(x0, x1, t, wh, wwt)

    count = jnp.float32(nc * ho * wo)
    return jnp.sum(out0), jnp.sum(out1), count


def criterion_dsn(preds, target, dsn_weight: float = 0.4) -> jax.Array:
    """Port of CriterionDSN.forward: dsn_weight * BCE(up(preds[0])) + BCE(up(preds[1]))."""
    s0, s1, count = dsn_loss_sums(preds[0], preds[1], target)
    return (jnp.float32(dsn_weight) * s0 + s1) / count


def _reference(preds, target, dsn_weight=0.4):
    """Pure-JAX reference for a sanity check."""
    def one(pred):
        n, c, hi, wi = pred.shape
        _, _, ho, wo = target.shape
        wh = jnp.asarray(bilinear_matrix(ho, hi))
        ww = jnp.asarray(bilinear_matrix(wo, wi))
        z = jnp.einsum("oh,nchw->ncow", wh, pred.astype(jnp.float32))
        z = jnp.einsum("ncow,qw->ncoq", z, ww)
        y = target.astype(jnp.float32)
        l = jnp.maximum(z, 0.0) - z * y + jnp.log1p(jnp.exp(-jnp.abs(z)))
        return jnp.mean(l)
    return dsn_weight * one(preds[0]) + one(preds[1])


if __name__ == "__main__":
    key = jax.random.PRNGKey(0)
    k1, k2, k3 = jax.random.split(key, 3)

    N, C = 2, 4
    HI, WI = 8, 8        # coarse prediction resolution
    HO, WO = 16, 16      # target resolution

    pred0 = jax.random.normal(k1, (N, C, HI, WI), dtype=jnp.float32)
    pred1 = jax.random.normal(k2, (N, C, HI, WI), dtype=jnp.float32)
    target = jax.nn.sigmoid(jax.random.normal(k3, (N, C, HO, WO), dtype=jnp.float32))

    out = criterion_dsn((pred0, pred1), target, dsn_weight=0.4)
    out = jax.block_until_ready(out)

    ref = jax.block_until_ready(_reference((pred0, pred1), target, dsn_weight=0.4))
    np.testing.assert_allclose(np.asarray(out), np.asarray(ref), rtol=1e-5, atol=1e-5)

    print("KERNEL_OK")
</pallas_src>

<mosaic_0001>
module attributes {stable_mosaic.version = 11 : i64} {
  func.func @_dsn_fused_kernel(%arg0: i32, %arg1: i32, %arg2: memref<8x8x128xf32, #tpu.memory_space<vmem>>, %arg3: memref<8x8x128xf32, #tpu.memory_space<vmem>>, %arg4: memref<8x16x16xf32, #tpu.memory_space<vmem>>, %arg5: memref<16x8xf32, #tpu.memory_space<vmem>>, %arg6: memref<128x16xf32, #tpu.memory_space<vmem>>, %arg7: memref<1x8x16xf32, #tpu.memory_space<vmem>>, %arg8: memref<1x8x16xf32, #tpu.memory_space<vmem>>, %arg9: memref<8x16xf32, #tpu.memory_space<vmem>>, %arg10: memref<8x16xf32, #tpu.memory_space<vmem>>) attributes {dimension_semantics = [#tpu.dimension_semantics<parallel>, #tpu.dimension_semantics<arbitrary>], iteration_bounds = array<i64: 1, 1>, scalar_prefetch = 0 : i64, scratch_operands = 2 : i64, tpu.core_type = #tpu.core_type<tc>, window_params = [{transform_indices = @transform_0, window_bounds = array<i64: 8, 8, 128>}, {transform_indices = @transform_1, window_bounds = array<i64: 8, 8, 128>}, {transform_indices = @transform_2, window_bounds = array<i64: 8, 16, 16>}, {transform_indices = @transform_3, window_bounds = array<i64: 16, 8>}, {pipeline_mode = #tpu.pipeline_mode<synchronous>, transform_indices = @transform_4, window_bounds = array<i64: 128, 16>}, {transform_indices = @transform_5, window_bounds = array<i64: 1, 8, 16>}, {transform_indices = @transform_6, window_bounds = array<i64: 1, 8, 16>}]} {
    %c0_i32 = arith.constant 0 : i32
    %0 = arith.cmpi eq, %arg1, %c0_i32 : i32
    %1 = arith.extui %0 : i1 to i32
    %c0_i32_0 = arith.constant 0 : i32
    %2 = arith.cmpi ne, %1, %c0_i32_0 : i32
    scf.if %2 {
      %cst_34 = arith.constant 0.000000e+00 : f32
      %54 = vector.broadcast %cst_34 : f32 to vector<8x16xf32>
      %c0_35 = arith.constant 0 : index
      %c0_36 = arith.constant 0 : index
      %55 = vector.load %arg9[%c0_35, %c0_36] : memref<8x16xf32, #tpu.memory_space<vmem>>, vector<8x16xf32>
      tpu.vector_store %arg9[%c0_35, %c0_36], %54 {strides = array<i32>} : memref<8x16xf32, #tpu.memory_space<vmem>>, vector<8x16xf32>,
      %cst_37 = arith.constant 0.000000e+00 : f32
      %56 = vector.broadcast %cst_37 : f32 to vector<8x16xf32>
      %c0_38 = arith.constant 0 : index
      %c0_39 = arith.constant 0 : index
      %57 = vector.load %arg10[%c0_38, %c0_39] : memref<8x16xf32, #tpu.memory_space<vmem>>, vector<8x16xf32>
      tpu.vector_store %arg10[%c0_38, %c0_39], %56 {strides = array<i32>} : memref<8x16xf32, #tpu.memory_space<vmem>>, vector<8x16xf32>,
    } else {
    }
    %c0 = arith.constant 0 : index
    %c0_1 = arith.constant 0 : index
    %3 = vector.load %arg5[%c0, %c0_1] : memref<16x8xf32, #tpu.memory_space<vmem>>, vector<16x8xf32>
    %4 = vector.shape_cast %3 : vector<16x8xf32> to vector<1x16x8xf32>
    %5 = vector.shape_cast %4 : vector<1x16x8xf32> to vector<1x16x8xf32>
    %6 = vector.broadcast %5 : vector<1x16x8xf32> to vector<8x16x8xf32>
    %c0_2 = arith.constant 0 : index
    %c0_3 = arith.constant 0 : index
    %7 = vector.load %arg6[%c0_2, %c0_3] : memref<128x16xf32, #tpu.memory_space<vmem>>, vector<128x16xf32>
    %c0_4 = arith.constant 0 : index
    %c0_5 = arith.constant 0 : index
    %c0_6 = arith.constant 0 : index
    %8 = vector.load %arg4[%c0_4, %c0_5, %c0_6] : memref<8x16x16xf32, #tpu.memory_space<vmem>>, vector<8x16x16xf32>
    %c0_7 = arith.constant 0 : index
    %c0_8 = arith.constant 0 : index
    %9 = vector.load %arg9[%c0_7, %c0_8] : memref<8x16xf32, #tpu.memory_space<vmem>>, vector<8x16xf32>
    %c0_9 = arith.constant 0 : index
    %c0_10 = arith.constant 0 : index
    %c0_11 = arith.constant 0 : index
    %10 = vector.load %arg2[%c0_9, %c0_10, %c0_11] : memref<8x8x128xf32, #tpu.memory_space<vmem>>, vector<8x8x128xf32>
    "tpu.trace_start"() <{level = 10 : i32, message = "bth,bhw->btw"}> : () -> ()
    %cst = arith.constant dense<0.000000e+00> : vector<8x16x128xf32>
    %11 = tpu.matmul %6, %10, %cst {dimension_numbers = #tpu.dot_dimension_numbers<[2], [1], [1], [2], [0, 0, 0, 1, 1, 2], [0], [0]>} : vector<8x16x8xf32>, vector<8x8x128xf32>, vector<8x16x128xf32> -> vector<8x16x128xf32>
    "tpu.trace_stop"() : () -> ()
    %12 = vector.shape_cast %11 : vector<8x16x128xf32> to vector<128x128xf32>
    %cst_12 = arith.constant dense<0.000000e+00> : vector<128x16xf32>
    %13 = tpu.matmul %12, %7, %cst_12 {dimension_numbers = #tpu.dot_dimension_numbers<[1], [0], [0], [1], [0, 0, 1, 1], [], []>} : vector<128x128xf32>, vector<128x16xf32>, vector<128x16xf32> -> vector<128x16xf32>
    %14 = vector.shape_cast %13 : vector<128x16xf32> to vector<8x16x16xf32>
    %cst_13 = arith.constant 0.000000e+00 : f32
    %15 = vector.broadcast %cst_13 : f32 to vector<8x16x16xf32>
    %16 = arith.maximumf %14, %15 : vector<8x16x16xf32>
    %17 = arith.mulf %14, %8 : vector<8x16x16xf32>
    %18 = arith.subf %16, %17 : vector<8x16x16xf32>
    %19 = math.absf %14 : vector<8x16x16xf32>
    %cst_14 = arith.constant 0.000000e+00 : f32
    %20 = vector.broadcast %cst_14 : f32 to vector<8x16x16xf32>
    %21 = arith.subf %20, %19 : vector<8x16x16xf32>
    %22 = math.exp %21 : vector<8x16x16xf32>
    %23 = math.log1p %22 : vector<8x16x16xf32>
    %24 = arith.addf %18, %23 : vector<8x16x16xf32>
    %cst_15 = arith.constant dense<0.000000e+00> : vector<16x16xf32>
    %25 = vector.multi_reduction <add>, %24, %cst_15 [0] : vector<8x16x16xf32> to vector<16x16xf32>
    %26 = vector.shape_cast %25 : vector<16x16xf32> to vector<2x8x16xf32>
    %cst_16 = arith.constant dense<0.000000e+00> : vector<8x16xf32>
    %27 = vector.multi_reduction <add>, %26, %cst_16 [0] : vector<2x8x16xf32> to vector<8x16xf32>
    %28 = arith.addf %9, %27 : vector<8x16xf32>
    %c0_17 = arith.constant 0 : index
    %c0_18 = arith.constant 0 : index
    %29 = vector.load %arg9[%c0_17, %c0_18] : memref<8x16xf32, #tpu.memory_space<vmem>>, vector<8x16xf32>
    tpu.vector_store %arg9[%c0_17, %c0_18], %28 {strides = array<i32>} : memref<8x16xf32, #tpu.memory_space<vmem>>, vector<8x16xf32>,
    %c0_19 = arith.constant 0 : index
    %c0_20 = arith.constant 0 : index
    %30 = vector.load %arg10[%c0_19, %c0_20] : memref<8x16xf32, #tpu.memory_space<vmem>>, vector<8x16xf32>
    %c0_21 = arith.constant 0 : index
    %c0_22 = arith.constant 0 : index
    %c0_23 = arith.constant 0 : index
    %31 = vector.load %arg3[%c0_21, %c0_22, %c0_23] : memref<8x8x128xf32, #tpu.memory_space<vmem>>, vector<8x8x128xf32>
    "tpu.trace_start"() <{level = 10 : i32, message = "bth,bhw->btw"}> : () -> ()
    %cst_24 = arith.constant dense<0.000000e+00> : vector<8x16x128xf32>
    %32 = tpu.matmul %6, %31, %cst_24 {dimension_numbers = #tpu.dot_dimension_numbers<[2], [1], [1], [2], [0, 0, 0, 1, 1, 2], [0], [0]>} : vector<8x16x8xf32>, vector<8x8x128xf32>, vector<8x16x128xf32> -> vector<8x16x128xf32>
    "tpu.trace_stop"() : () -> ()
    %33 = vector.shape_cast %32 : vector<8x16x128xf32> to vector<128x128xf32>
    %cst_25 = arith.constant dense<0.000000e+00> : vector<128x16xf32>
    %34 = tpu.matmul %33, %7, %cst_25 {dimension_numbers = #tpu.dot_dimension_numbers<[1], [0], [0], [1], [0, 0, 1, 1], [], []>} : vector<128x128xf32>, vector<128x16xf32>, vector<128x16xf32> -> vector<128x16xf32>
    %35 = vector.shape_cast %34 : vector<128x16xf32> to vector<8x16x16xf32>
    %cst_26 = arith.constant 0.000000e+00 : f32
    %36 = vector.broadcast %cst_26 : f32 to vector<8x16x16xf32>
    %37 = arith.maximumf %35, %36 : vector<8x16x16xf32>
    %38 = arith.mulf %35, %8 : vector<8x16x16xf32>
    %39 = arith.subf %37, %38 : vector<8x16x16xf32>
    %40 = math.absf %35 : vector<8x16x16xf32>
    %cst_27 = arith.constant 0.000000e+00 : f32
    %41 = vector.broadcast %cst_27 : f32 to vector<8x16x16xf32>
    %42 = arith.subf %41, %40 : vector<8x16x16xf32>
    %43 = math.exp %42 : vector<8x16x16xf32>
    %44 = math.log1p %43 : vector<8x16x16xf32>
    %45 = arith.addf %39, %44 : vector<8x16x16xf32>
    %cst_28 = arith.constant dense<0.000000e+00> : vector<16x16xf32>
    %46 = vector.multi_reduction <add>, %45, %cst_28 [0] : vector<8x16x16xf32> to vector<16x16xf32>
    %47 = vector.shape_cast %46 : vector<16x16xf32> to vector<2x8x16xf32>
    %cst_29 = arith.constant dense<0.000000e+00> : vector<8x16xf32>
    %48 = vector.multi_reduction <add>, %47, %cst_29 [0] : vector<2x8x16xf32> to vector<8x16xf32>
    %49 = arith.addf %30, %48 : vector<8x16xf32>
    %c0_30 = arith.constant 0 : index
    %c0_31 = arith.constant 0 : index
    %50 = vector.load %arg10[%c0_30, %c0_31] : memref<8x16xf32, #tpu.memory_space<vmem>>, vector<8x16xf32>
    tpu.vector_store %arg10[%c0_30, %c0_31], %49 {strides = array<i32>} : memref<8x16xf32, #tpu.memory_space<vmem>>, vector<8x16xf32>,
    %c0_i32_32 = arith.constant 0 : i32
    %51 = arith.cmpi eq, %arg1, %c0_i32_32 : i32
    %52 = arith.extui %51 : i1 to i32
    %c0_i32_33 = arith.constant 0 : i32
    %53 = arith.cmpi ne, %52, %c0_i32_33 : i32
    scf.if %53 {
      %c0_34 = arith.constant 0 : index
      %c0_35 = arith.constant 0 : index
      %54 = vector.load %arg9[%c0_34, %c0_35] : memref<8x16xf32, #tpu.memory_space<vmem>>, vector<8x16xf32>
      %c0_36 = arith.constant 0 : index
      %c0_37 = arith.constant 0 : index
      %c0_38 = arith.constant 0 : index
      %55 = vector.load %arg7[%c0_36, %c0_37, %c0_38] : memref<1x8x16xf32, #tpu.memory_space<vmem>>, vector<1x8x16xf32>
      %56 = vector.shape_cast %55 : vector<1x8x16xf32> to vector<8x16xf32>
      %57 = vector.shape_cast %54 : vector<8x16xf32> to vector<1x8x16xf32>
      tpu.vector_store %arg7[%c0_36, %c0_37, %c0_38], %57 {strides = array<i32>} : memref<1x8x16xf32, #tpu.memory_space<vmem>>, vector<1x8x16xf32>,
      %c0_39 = arith.constant 0 : index
      %c0_40 = arith.constant 0 : index
      %58 = vector.load %arg10[%c0_39, %c0_40] : memref<8x16xf32, #tpu.memory_space<vmem>>, vector<8x16xf32>
      %c0_41 = arith.constant 0 : index
      %c0_42 = arith.constant 0 : index
      %c0_43 = arith.constant 0 : index
      %59 = vector.load %arg8[%c0_41, %c0_42, %c0_43] : memref<1x8x16xf32, #tpu.memory_space<vmem>>, vector<1x8x16xf32>
      %60 = vector.shape_cast %59 : vector<1x8x16xf32> to vector<8x16xf32>
      %61 = vector.shape_cast %58 : vector<8x16xf32> to vector<1x8x16xf32>
      tpu.vector_store %arg8[%c0_41, %c0_42, %c0_43], %61 {strides = array<i32>} : memref<1x8x16xf32, #tpu.memory_space<vmem>>, vector<1x8x16xf32>,
    } else {
    }
    return
  }
  func.func @transform_0(%arg0: i32, %arg1: i32) -> (i32, i32, i32) {
    %c0_i32 = arith.constant 0 : i32
    %c0_i32_0 = arith.constant 0 : i32
    %c0_i32_1 = arith.constant 0 : i32
    return %arg0, %c0_i32, %c0_i32_0 : i32, i32, i32
  }
  func.func @transform_1(%arg0: i32, %arg1: i32) -> (i32, i32, i32) {
    %c0_i32 = arith.constant 0 : i32
    %c0_i32_0 = arith.constant 0 : i32
    %c0_i32_1 = arith.constant 0 : i32
    return %arg0, %c0_i32, %c0_i32_0 : i32, i32, i32
  }
  func.func @transform_2(%arg0: i32, %arg1: i32) -> (i32, i32, i32) {
    %c0_i32 = arith.constant 0 : i32
    %c0_i32_0 = arith.constant 0 : i32
    return %arg0, %arg1, %c0_i32 : i32, i32, i32
  }
  func.func @transform_3(%arg0: i32, %arg1: i32) -> (i32, i32) {
    %c0_i32 = arith.constant 0 : i32
    %c0_i32_0 = arith.constant 0 : i32
    return %arg1, %c0_i32 : i32, i32
  }
  func.func @transform_4(%arg0: i32, %arg1: i32) -> (i32, i32) {
    %c0_i32 = arith.constant 0 : i32
    %c0_i32_0 = arith.constant 0 : i32
    %c0_i32_1 = arith.constant 0 : i32
    return %c0_i32, %c0_i32_0 : i32, i32
  }
  func.func @transform_5(%arg0: i32, %arg1: i32) -> (i32, i32, i32) {
    %c0_i32 = arith.constant 0 : i32
    %c0_i32_0 = arith.constant 0 : i32
    %c0_i32_1 = arith.constant 0 : i32
    return %arg0, %c0_i32, %c0_i32_0 : i32, i32, i32
  }
  func.func @transform_6(%arg0: i32, %arg1: i32) -> (i32, i32, i32) {
    %c0_i32 = arith.constant 0 : i32
    %c0_i32_0 = arith.constant 0 : i32
    %c0_i32_1 = arith.constant 0 : i32
    return %arg0, %c0_i32, %c0_i32_0 : i32, i32, i32
  }
}

</mosaic_0001>

<bundles_post_ra>
// kernel: tpu_custom_call.1
= control target key start
LH: loop header
LB: loop body
LE: loop exit
PB: predicated region body
PF: predicated region fallthrough
CT: control target
= control target key end

     0   :  { %12 = vsyncpa [#allocation5], 0  ;;  %s2500_s0 = inlined_call_operand.hbm [shape: f32[8,8,128], index: 0, kind: input, shape index: {}]   ;;  %s2501_s1 = inlined_call_operand.hbm [shape: f32[8,8,128], index: 1, kind: input, shape index: {}]   ;;  %s2502_s2 = inlined_call_operand.vmem [shape: f32[8,16,16], index: 2, kind: input, shape index: {}]   ;;  %s2503_s3 = inlined_call_operand.vmem [shape: f32[16,8], index: 3, kind: input, shape index: {}]   ;;  %s2504_s4 = inlined_call_operand.vmem [shape: f32[128,16], index: 4, kind: input, shape index: {}]   ;;  %s2505_s5 = inlined_call_operand.hbm [shape: f32[1,8,16], index: 5, kind: output, shape index: {0}]   ;;  %s2506_s6 = inlined_call_operand.hbm [shape: f32[1,8,16], index: 6, kind: output, shape index: {1}]  }
   0x1   :  { %13 = vsyncpa [#allocation8], 0 }
   0x2   :  { %14 = vsyncpa [#allocation6], 0 }
   0x3   :  { %15 = vsyncpa [#allocation11], 0  ;;  %s20_s23 = sshll.u32 %s2500_s0, 4  ;;  %s1581_s24 = smov [#allocation4]   ;;  %s21_s23 = int_to_ptr.hbm [resolvable:$true] %s20_s23 }
   0x4   :  { %s22_s25 = sshll.u32 %s1581_s24, 4  ;;  %s33_s28 = sshll.u32 %s2501_s1, 4  ;;  %s23_s25 = int_to_ptr.vmem [resolvable:$true] %s22_s25  ;;  %s34_s28 = int_to_ptr.hbm [resolvable:$true] %s33_s28 }
   0x5   :  { %s1582_s29 = smov 128   ;;  %s1583_s30 = smov 8  }
   0x6   :  { %28 = dma.hbm_to_vmem [thread:$0]  %s21_s23, 1024, %s23_s25, [#allocation5], %s1582_s29, %s1582_s29, %s1583_s30  }
   0x7   :  { %s1584_s7 = smov [#allocation7]  }
   0x8   :  { %s35_s8 = sshll.u32 %s1584_s7, 4  ;;  %s36_s8 = int_to_ptr.vmem [resolvable:$true] %s35_s8 }
   0x9   :  { %41 = dma.hbm_to_vmem [thread:$0]  %s34_s28, 1024, %s36_s8, [#allocation8], %s1582_s29, %s1582_s29, %s1583_s30  }
   0xa   :  { %1573 = dma.done.wait [#allocation5], 1024  }
   0xb   :  { %1574 = vsyncadd [#allocation5], 4294966272 }
   0xc   :  { %1575 = dma.done.wait [#allocation8], 1024  }
   0xd   :  { %1576 = vsyncadd [#allocation8], 4294966272  ;;  %vm106_vm0 = vcmask 64512   ;;  %v98_v0 = vld [vmem:[#allocation4] sm:$0xff]  ;;  %v99_v1 = vld [vmem:[#allocation4 + $0x8] sm:$0xff]  ;;  %vm60_vm2 = vcmask 130048  }
   0xe   :  { %v1632_v2 = vld [vmem:[%s2503_s3] sm:$0xff]  ;;  %128 = vmatpush.msra.mxu0 %v98_v0  ;;  %151 = vmatpush.msra.mxu2 %v99_v1  ;;  %v101_v5 = vld [vmem:[#allocation4 + $0x18] sm:$0xff]  ;;  %v102_v8 = vld [vmem:[#allocation4 + $0x20] sm:$0xff]  ;;  %s1249_s20 = sshll.u32 %s2505_s5, 4  ;;  %s1586_s21 = smov [#allocation9]   ;;  %s1250_s20 = int_to_ptr.hbm [resolvable:$true] %s1249_s20 }
   0xf   :  { %v100_v3 = vld [vmem:[#allocation4 + $0x10] sm:$0xff]  ;;  %1276 = vmatmul.msk.f32.vlgmr.msra.gmra.mxu0 %vm106_vm0, %v1632_v2  ;;  %1278 = vmatmul.msk.f32.vlgmr.msra.gmra.mxu2 %vm106_vm0, %v1632_v2  ;;  %v105_v6 = vld [vmem:[#allocation4 + $0x38] sm:$0xff]  ;;  %v103_v9 = vld [vmem:[#allocation4 + $0x28] sm:$0xff]  ;;  %s1247_s22 = sshll.u32 %s1586_s21, 4  ;;  %s1260_s29 = sshll.u32 %s2506_s6, 4  ;;  %s1248_s22 = int_to_ptr.vmem [resolvable:$true] %s1247_s22  ;;  %s1261_s29 = int_to_ptr.hbm [resolvable:$true] %s1260_s29 }
  0x10   :  { %v104_v4 = vld [vmem:[#allocation4 + $0x30] sm:$0xff]  ;;  %174 = vmatpush.msrb.mxu2 %v100_v3  ;;  %197 = vmatpush.msra.mxu3 %v101_v5  ;;  %v1643_v7 = vld [vmem:[%s2503_s3 + $0x8] sm:$0xff]  ;;  %v1652_v10 = vld [vmem:[%s2504_s4 + $0x78] sm:$0xff] }
  0x11   :  { %1282 = vmatmul.msk.f32.vlgmr.msra.gmra.mxu3 %vm106_vm0, %v1632_v2  ;;  %220 = vmatpush.msrb.mxu0 %v102_v8  ;;  %v1661_v11 = vld [vmem:[%s2504_s4 + $0x70] sm:$0xff]  ;;  %v1667_v12 = vld [vmem:[%s2504_s4 + $0x68] sm:$0xff]  ;;  %v1673_v13 = vld [vmem:[%s2504_s4 + $0x60] sm:$0xff] }
  0x12   :  { %266 = vmatpush.msra.mxu2 %v104_v4  ;;  %289 = vmatpush.msrb.mxu3 %v105_v6  ;;  %v1683_v14 = vld [vmem:[%s2504_s4 + $0x58] sm:$0xff]  ;;  %v1694_v15 = vld [vmem:[%s2504_s4 + $0x50] sm:$0xff]  ;;  %v1701_v16 = vld [vmem:[%s2504_s4 + $0x48] sm:$0xff] }
  0x13   :  { %243 = vmatpush.msra.mxu1 %v103_v9  ;;  %297 = vmatpush.msra.mxu0 %v1652_v10  ;;  %v1708_v17 = vld [vmem:[%s2504_s4 + $0x40] sm:$0xff]  ;;  %v1719_v18 = vld [vmem:[%s2504_s4 + $0x38] sm:$0xff]  ;;  %v1728_v19 = vld [vmem:[%s2504_s4 + $0x30] sm:$0xff] }
  0x14   :  { %1286 = vmatmul.msk.f32.vlgmr.msra.gmra.mxu1 %vm106_vm0, %v1632_v2  ;;  %v1735_v20 = vld [vmem:[%s2504_s4 + $0x28] sm:$0xff]  ;;  %v1742_v21 = vld [vmem:[%s2504_s4 + $0x20] sm:$0xff]  ;;  %v1751_v22 = vld [vmem:[%s2504_s4 + $0x18] sm:$0xff] }
  0x15   :  { %298 = vmatpush.msra.mxu0 %v1661_v11  ;;  %v1758_v23 = vld [vmem:[%s2504_s4 + $0x10] sm:$0xff]  ;;  %v1765_v24 = vld [vmem:[%s2504_s4 + $0x8] sm:$0xff]  ;;  %v1779_v25 = vld [vmem:[%s2504_s4] sm:$0xff] }
  0x16   :  { %v672_v28 = vld [vmem:[#allocation7 + $0x8] sm:$0xff]  ;;  %v671_v32 = vld [vmem:[#allocation7] sm:$0xff]  ;;  %v673_v36 = vld [vmem:[#allocation7 + $0x10] sm:$0xff] }
  0x17   :  { %1277 = vmatmul.msk.f32.gmra.mxu0 %vm106_vm0, %v1643_v7  ;;  %1279 = vmatmul.msk.f32.gmra.mxu2 %vm106_vm0, %v1643_v7  ;;  %v675_v37 = vld [vmem:[#allocation7 + $0x20] sm:$0xff]  ;;  %v676_v41 = vld [vmem:[#allocation7 + $0x28] sm:$0xff]  ;;  %v674_v42 = vld [vmem:[#allocation7 + $0x18] sm:$0xff] }
  0x18   :  { %299 = vmatpush.msra.mxu0 %v1667_v12  ;;  %694 = vmatpush.msrb.mxu1 %v671_v32  ;;  %v677_v45 = vld [vmem:[#allocation7 + $0x30] sm:$0xff]  ;;  %v678_v46 = vld [vmem:[#allocation7 + $0x38] sm:$0xff] }
  0x19   :  { %1283 = vmatmul.msk.f32.gmra.mxu3 %vm106_vm0, %v1643_v7  ;;  %v1859_v5 = vld [vmem:[%s2502_s2] sm:$0xff] }
  0x1a   :  { %300 = vmatpush.msra.mxu0 %v1673_v13  ;;  %740 = vmatpush.msra.mxu3 %v673_v36 }
  0x1b   :  { %763 = vmatpush.msra.mxu1 %v674_v42 }
  0x1c   :  { %1287 = vmatmul.msk.f32.gmra.mxu1 %vm106_vm0, %v1643_v7  ;;  %301 = vmatpush.msra.mxu0 %v1683_v14 }
  0x1e   :  { %302 = vmatpush.msra.mxu0 %v1694_v15 }
  0x1f   :  { %1280 = vmatmul.msk.f32.vlgmr.msrb.gmra.mxu2 %vm106_vm0, %v1632_v2  ;;  %1284 = vmatmul.msk.f32.vlgmr.msrb.gmra.mxu0 %vm106_vm0, %v1632_v2 }
  0x20   :  { %1308 = vmatpush.msrb.mxu2 %v1652_v10  ;;  %303 = vmatpush.msra.mxu0 %v1701_v16 }
  0x21   :  { %1290 = vmatmul.msk.f32.vlgmr.msrb.gmra.mxu3 %vm106_vm0, %v1632_v2 }
  0x22   :  { %1309 = vmatpush.msrb.mxu2 %v1661_v11  ;;  %304 = vmatpush.msra.mxu0 %v1708_v17 }
  0x23   :  { %809 = vmatpush.msrb.mxu3 %v676_v41 }
  0x24   :  { %1310 = vmatpush.msrb.mxu2 %v1667_v12  ;;  %305 = vmatpush.msra.mxu0 %v1719_v18 }
  0x25   :  { %1292 = vmatmul.msk.f32.vlgmr.msrb.gmra.mxu1 %vm106_vm0, %v1632_v2 }
  0x26   :  { %1311 = vmatpush.msrb.mxu2 %v1673_v13  ;;  %306 = vmatpush.msra.mxu0 %v1728_v19 }
  0x27   :  { %1281 = vmatmul.msk.f32.gmra.mxu2 %vm106_vm0, %v1643_v7  ;;  %1285 = vmatmul.msk.f32.gmra.mxu0 %vm106_vm0, %v1643_v7 }
  0x28   :  { %1312 = vmatpush.msrb.mxu2 %v1683_v14  ;;  %307 = vmatpush.msra.mxu0 %v1735_v20 }
  0x29   :  { %1291 = vmatmul.msk.f32.gmra.mxu3 %vm106_vm0, %v1643_v7  ;;  %832 = vmatpush.msrb.mxu1 %v677_v45 }
  0x2a   :  { %1313 = vmatpush.msrb.mxu2 %v1694_v15  ;;  %308 = vmatpush.msra.mxu0 %v1742_v21 }
  0x2c   :  { %1314 = vmatpush.msrb.mxu2 %v1701_v16  ;;  %309 = vmatpush.msra.mxu0 %v1751_v22 }
  0x2d   :  { %1293 = vmatmul.msk.f32.gmra.mxu1 %vm106_vm0, %v1643_v7 }
  0x2e   :  { %1315 = vmatpush.msrb.mxu2 %v1708_v17  ;;  %310 = vmatpush.msra.mxu0 %v1758_v23 }
  0x2f   :  { %1288 = vmatmul.msk.f32.vlgmr.msra.gmra.mxu2 %vm106_vm0, %v1632_v2 }
  0x30   :  { %1316 = vmatpush.msrb.mxu2 %v1719_v18  ;;  %311 = vmatpush.msra.mxu0 %v1765_v24 }
  0x31   :  { %1296 = vmatmul.msk.f32.vlgmr.msra.gmra.mxu3 %vm106_vm0, %v1632_v2 }
  0x32   :  { %1317 = vmatpush.msrb.mxu2 %v1728_v19  ;;  %312 = vmatpush.msra.mxu0 %v1779_v25 }
  0x33   :  { %1324 = vmatpush.msra.mxu3 %v1652_v10 }
  0x34   :  { %1318 = vmatpush.msrb.mxu2 %v1735_v20 }
  0x35   :  { %1298 = vmatmul.msk.f32.vlgmr.msra.gmra.mxu1 %vm106_vm0, %v1632_v2  ;;  %1325 = vmatpush.msra.mxu3 %v1661_v11 }
  0x36   :  { %1319 = vmatpush.msrb.mxu2 %v1742_v21  ;;  %863 = vmatpush.msra.mxu1 %v1652_v10 }
  0x37   :  { %1289 = vmatmul.msk.f32.gmra.mxu2 %vm106_vm0, %v1643_v7  ;;  %1326 = vmatpush.msra.mxu3 %v1667_v12 }
  0x38   :  { %1320 = vmatpush.msrb.mxu2 %v1751_v22  ;;  %864 = vmatpush.msra.mxu1 %v1661_v11 }
  0x39   :  { %1297 = vmatmul.msk.f32.gmra.mxu3 %vm106_vm0, %v1643_v7 }
  0x3a   :  { %1321 = vmatpush.msrb.mxu2 %v1758_v23  ;;  %1327 = vmatpush.msra.mxu3 %v1673_v13 }
  0x3b   :  { %865 = vmatpush.msra.mxu1 %v1667_v12 }
  0x3c   :  { %1322 = vmatpush.msrb.mxu2 %v1765_v24  ;;  %1328 = vmatpush.msra.mxu3 %v1683_v14 }
  0x3d   :  { %1299 = vmatmul.msk.f32.gmra.mxu1 %vm106_vm0, %v1643_v7 }
  0x3e   :  { %1323 = vmatpush.msrb.mxu2 %v1779_v25  ;;  %1329 = vmatpush.msra.mxu3 %v1694_v15 }
  0x3f   :  { %866 = vmatpush.msra.mxu1 %v1673_v13 }
  0x40   :  { %717 = vmatpush.msra.mxu2 %v672_v28  ;;  %1330 = vmatpush.msra.mxu3 %v1701_v16 }
  0x41   :  { %1302 = vmatmul.msk.f32.vlgmr.msrb.gmra.mxu3 %vm106_vm0, %v1632_v2  ;;  %867 = vmatpush.msra.mxu1 %v1683_v14 }
  0x42   :  { %1331 = vmatpush.msra.mxu3 %v1708_v17 }
  0x43   :  { %868 = vmatpush.msra.mxu1 %v1694_v15 }
  0x44   :  { %1332 = vmatpush.msra.mxu3 %v1719_v18 }
  0x45   :  { %1304 = vmatmul.msk.f32.vlgmr.msrb.gmra.mxu1 %vm106_vm0, %v1632_v2 }
  0x46   :  { %1333 = vmatpush.msra.mxu3 %v1728_v19  ;;  %869 = vmatpush.msra.mxu1 %v1701_v16 }
  0x48   :  { %1334 = vmatpush.msra.mxu3 %v1735_v20  ;;  %870 = vmatpush.msra.mxu1 %v1708_v17 }
  0x49   :  { %1303 = vmatmul.msk.f32.gmra.mxu3 %vm106_vm0, %v1643_v7 }
  0x4a   :  { %1335 = vmatpush.msra.mxu3 %v1742_v21  ;;  %871 = vmatpush.msra.mxu1 %v1719_v18 }
  0x4c   :  { %1336 = vmatpush.msra.mxu3 %v1751_v22  ;;  %872 = vmatpush.msra.mxu1 %v1728_v19 }
  0x4d   :  { %1305 = vmatmul.msk.f32.gmra.mxu1 %vm106_vm0, %v1643_v7 }
  0x4e   :  { %1337 = vmatpush.msra.mxu3 %v1758_v23  ;;  %873 = vmatpush.msra.mxu1 %v1735_v20 }
  0x50   :  { %1338 = vmatpush.msra.mxu3 %v1765_v24  ;;  %874 = vmatpush.msra.mxu1 %v1742_v21 }
  0x52   :  { %1339 = vmatpush.msra.mxu3 %v1779_v25  ;;  %875 = vmatpush.msra.mxu1 %v1751_v22  ;;  %v1871_v22 = vld [vmem:[%s2502_s2 + $0x10] sm:$0xff] }
  0x54   :  { %876 = vmatpush.msra.mxu1 %v1758_v23 }
  0x56   :  { %877 = vmatpush.msra.mxu1 %v1765_v24 }
  0x58   :  { %878 = vmatpush.msra.mxu1 %v1779_v25  ;;  %v1877_v25 = vld [vmem:[%s2502_s2 + $0x8] sm:$0xff] }
  0x8c   :  { %v130_v26 = vpop.f32.mrf.mxu0 }
  0x8d   :  { %313 = vmatmul.f32.vlgmr.msra.gmra.mxu0 %v130_v26 }
  0x91   :  { %v245_v48 = vpop.f32.mrf.mxu1 }
  0x92   :  { %v153_v27 = vpop.f32.mrf.mxu2 }
  0x94   :  { %v133_v29 = vpop.f32.mrf.mxu0  ;;  %v199_v34 = vpop.f32.mrf.mxu3 }
  0x95   :  { %316 = vmatmul.f32.gmra.mxu0 %v133_v29 }
  0x99   :  { %v248_v49 = vpop.f32.mrf.mxu1 }
  0x9a   :  { %v156_v30 = vpop.f32.mrf.mxu2 }
  0x9c   :  { %v202_v38 = vpop.f32.mrf.mxu3  ;;  %v222_v44 = vpop.f32.mrf.mxu0 }
  0x9d   :  { %319 = vmatmul.f32.gmra.mxu0 %v153_v27 }
  0xa2   :  { %v176_v31 = vpop.f32.mrf.mxu2  ;;  %v696_v19 = vpop.f32.mrf.mxu1 }
  0xa3   :  { %879 = vmatmul.f32.vlgmr.msra.gmra.mxu1 %v696_v19 }
  0xa4   :  { %v291_v40 = vpop.f32.mrf.mxu3  ;;  %v225_v47 = vpop.f32.mrf.mxu0 }
  0xa5   :  { %322 = vmatmul.f32.gmra.mxu0 %v156_v30 }
  0xaa   :  { %v179_v33 = vpop.f32.mrf.mxu2 }
  0xac   :  { %v294_v43 = vpop.f32.mrf.mxu3 }
  0xad   :  { %325 = vmatmul.f32.gmra.mxu0 %v176_v31 }
  0xb2   :  { %v268_v35 = vpop.f32.mrf.mxu2 }
  0xb3   :  { %349 = vmatmul.f32.vlgmr.msrb.gmra.mxu2 %v268_v35 }
  0xb4   :  { %786 = vmatpush.msrb.mxu2 %v675_v37 }
  0xb5   :  { %328 = vmatmul.f32.gmra.mxu0 %v179_v33 }
  0xba   :  { %v271_v39 = vpop.f32.mrf.mxu2 }
  0xbb   :  { %352 = vmatmul.f32.gmra.mxu2 %v271_v39 }
  0xbd   :  { %331 = vmatmul.f32.gmra.mxu0 %v199_v34 }
  0xc3   :  { %355 = vmatmul.f32.gmra.mxu2 %v291_v40 }
  0xc5   :  { %334 = vmatmul.f32.gmra.mxu0 %v202_v38 }
  0xcb   :  { %358 = vmatmul.f32.gmra.mxu2 %v294_v43 }
  0xcd   :  { %337 = vmatmul.f32.gmra.mxu0 %v222_v44 }
  0xd3   :  { %1294 = vmatmul.msk.f32.vlgmr.msra.gmra.mxu2 %vm106_vm0, %v1632_v2 }
  0xd4   :  { %855 = vmatpush.msra.mxu2 %v678_v46 }
  0xd5   :  { %340 = vmatmul.f32.gmra.mxu0 %v225_v47  ;;  %v699_v47 = vpop.f32.mrf.mxu1 }
  0xd6   :  { %882 = vmatmul.f32.gmra.mxu1 %v699_v47 }
  0xdb   :  { %1295 = vmatmul.msk.f32.gmra.mxu2 %vm106_vm0, %v1643_v7 }
  0xdd   :  { %343 = vmatmul.f32.gmra.mxu0 %v245_v48 }
  0xe3   :  { %1300 = vmatmul.msk.f32.vlgmr.msrb.gmra.mxu2 %vm106_vm0, %v1632_v2 }
  0xe5   :  { %346 = vmatmul.f32.gmra.mxu0 %v248_v49 }
  0xeb   :  { %1301 = vmatmul.msk.f32.gmra.mxu2 %vm106_vm0, %v1643_v7 }
  0xf3   :  { %1306 = vmatmul.msk.f32.vlgmr.msra.gmra.mxu2 %vm106_vm0, %v1632_v2 }
  0xfb   :  { %1307 = vmatmul.msk.f32.gmra.mxu2 %vm106_vm0, %v1643_v7 }
 0x10a   :  { %v314_v50 = vpop.f32.mrf.mxu0 }
 0x10b   :  { %v410_v51 = vand.u32 2147483647, %v314_v50  ;;  %v362_v12 = vmax.f32 %v314_v50, 0.0  ;;  %v378_v13 = vmul.f32 %v314_v50, %v1859_v5 }
 0x10d   :  { %v426_v52 = vsub.f32 0.0, %v410_v51  ;;  %v394_v24 = vsub.f32 %v362_v12, %v378_v13 }
 0x10f   :  { %v442_v53 = vmul.f32 1.442695, %v426_v52  ;;  %v1896_v52 = vld [vmem:[%s2502_s2 + $0x18] sm:$0xff] }
 0x111   :  { %1347 = vpow2.f32 %v442_v53 }
 0x112   :  { %v1847_v54 = vpop.f32.mrf.mxu0 }
 0x113   :  { %v411_v55 = vand.u32 2147483647, %v1847_v54  ;;  %v363_v36 = vmax.f32 %v1847_v54, 0.0  ;;  %v379_v37 = vmul.f32 %v1847_v54, %v1877_v25 }
 0x115   :  { %v427_v56 = vsub.f32 0.0, %v411_v55  ;;  %v395_v54 = vsub.f32 %v363_v36, %v379_v37 }
 0x117   :  { %v444_v57 = vmul.f32 1.442695, %v427_v56  ;;  %v1348_v58 = vpop.eup %1347 }
 0x118   :  { %v474_v61 = vadd.f32 1.0, %v1348_v58  ;;  %v477_v1 = vmul.f32 -0.5, %v1348_v58  ;;  %v480_v9 = vand.u32 2147483647, %v1348_v58 }
 0x119   :  { %1349 = vpow2.f32 %v444_v57 }
 0x11a   :  { %v1850_v59 = vpop.f32.mrf.mxu0  ;;  %1351 = vlog2.f32 %v474_v61  ;;  %v478_v6 = vadd.f32 1.0, %v477_v1  ;;  %vm1862_vm1 = vcmp.lt.f32.partialorder %v480_v9, 0.0004427343 }
 0x11b   :  { %v412_v60 = vand.u32 2147483647, %v1850_v59  ;;  %v364_v32 = vmax.f32 %v1850_v59, 0.0  ;;  %v380_v33 = vmul.f32 %v1850_v59, %v1871_v22 }
 0x11c   :  { %v479_v17 = vmul.f32 %v1348_v58, %v478_v6 }
 0x11d   :  { %v428_v62 = vsub.f32 0.0, %v412_v60  ;;  %v396_v49 = vsub.f32 %v364_v32, %v380_v33 }
 0x11f   :  { %v446_v63 = vmul.f32 1.442695, %v428_v62  ;;  %v1350_v0 = vpop.eup %1349 }
 0x120   :  { %v483_v3 = vadd.f32 1.0, %v1350_v0  ;;  %v1352_v8 = vpop.eup %1351  ;;  %v486_v14 = vmul.f32 -0.5, %v1350_v0  ;;  %v489_v31 = vand.u32 2147483647, %v1350_v0 }
 0x121   :  { %1353 = vpow2.f32 %v446_v63  ;;  %v476_v16 = vmul.f32 0.6931472, %v1352_v8 }
 0x122   :  { %v1853_v2 = vpop.f32.mrf.mxu0  ;;  %1355 = vlog2.f32 %v483_v3  ;;  %v487_v26 = vadd.f32 1.0, %v486_v14  ;;  %vm1887_vm3 = vcmp.lt.f32.partialorder %v489_v31, 0.0004427343  ;;  %v1914_v14 = vld [vmem:[%s2502_s2 + $0x20] sm:$0xff] }
 0x123   :  { %v413_v4 = vand.u32 2147483647, %v1853_v2  ;;  %v482_v28 = vsel %vm1862_vm1, %v479_v17, %v476_v16  ;;  %v365_v60 = vmax.f32 %v1853_v2, 0.0  ;;  %v381_v61 = vmul.f32 %v1853_v2, %v1896_v52 }
 0x124   :  { %v618_v40 = vadd.f32 %v482_v28, %v394_v24  ;;  %v488_v42 = vmul.f32 %v1350_v0, %v487_v26 }
 0x125   :  { %v429_v7 = vsub.f32 0.0, %v413_v4 }
 0x126   :  { %v635_v53 = vsel %vm60_vm2, %v618_v40, 0.0 }
 0x127   :  { %v1354_v10 = vpop.eup %1353  ;;  %v448_v11 = vmul.f32 1.442695, %v429_v7 }
 0x128   :  { %v492_v15 = vadd.f32 1.0, %v1354_v10  ;;  %v495_v18 = vmul.f32 -0.5, %v1354_v10  ;;  %v1356_v27 = vpop.eup %1355  ;;  %v498_v34 = vand.u32 2147483647, %v1354_v10 }
 0x129   :  { %1357 = vpow2.f32 %v448_v11  ;;  %v485_v41 = vmul.f32 0.6931472, %v1356_v27  ;;  %v397_v11 = vsub.f32 %v365_v60, %v381_v61 }
 0x12a   :  { %1359 = vlog2.f32 %v492_v15  ;;  %v1866_v21 = vpop.f32.mrf.mxu0  ;;  %v496_v29 = vadd.f32 1.0, %v495_v18  ;;  %vm499_vm4 = vcmp.lt.f32.partialorder %v498_v34, 0.0004427343 }
 0x12b   :  { %v414_v23 = vand.u32 2147483647, %v1866_v21  ;;  %v491_v56 = vsel %vm1887_vm3, %v488_v42, %v485_v41  ;;  %v366_v17 = vmax.f32 %v1866_v21, 0.0 }
 0x12c   :  { %v497_v45 = vmul.f32 %v1354_v10, %v496_v29  ;;  %v619_v4 = vadd.f32 %v491_v56, %v395_v54  ;;  %v1948_v54 = vld [vmem:[%s2502_s2 + $0x28] sm:$0xff] }
 0x12d   :  { %v430_v30 = vsub.f32 0.0, %v414_v23  ;;  %v382_v23 = vmul.f32 %v1866_v21, %v1914_v14 }
 0x12e   :  { %v650_v15 = vsel %vm60_vm2, %v619_v4, 0.0 }
 0x12f   :  { %v1358_v35 = vpop.eup %1357  ;;  %v450_v38 = vmul.f32 1.442695, %v430_v30  ;;  %v398_v33 = vsub.f32 %v366_v17, %v382_v23 }
 0x130   :  { %v1360_v39 = vpop.eup %1359  ;;  %v501_v43 = vadd.f32 1.0, %v1358_v35  ;;  %v504_v46 = vmul.f32 -0.5, %v1358_v35  ;;  %v507_v62 = vand.u32 2147483647, %v1358_v35 }
 0x131   :  { %v494_v44 = vmul.f32 0.6931472, %v1360_v39  ;;  %1361 = vpow2.f32 %v450_v38 }
 0x132   :  { %1363 = vlog2.f32 %v501_v43  ;;  %v1891_v50 = vpop.f32.mrf.mxu0  ;;  %v505_v57 = vadd.f32 1.0, %v504_v46  ;;  %vm508_vm5 = vcmp.lt.f32.partialorder %v507_v62, 0.0004427343 }
 0x133   :  { %v500_v51 = vsel %vm499_vm4, %v497_v45, %v494_v44  ;;  %v415_v58 = vand.u32 2147483647, %v1891_v50  ;;  %v367_v60 = vmax.f32 %v1891_v50, 0.0 }
 0x134   :  { %v620_v55 = vadd.f32 %v500_v51, %v396_v49  ;;  %v506_v8 = vmul.f32 %v1358_v35, %v505_v57  ;;  %v93_v57 = vld [vmem:[%s2502_s2 + $0x60] sm:$0xff] }
 0x135   :  { %v431_v10 = vsub.f32 0.0, %v415_v58  ;;  %v1958_v58 = vld [vmem:[%s2502_s2 + $0x30] sm:$0xff] }
 0x136   :  { %v636_v59 = vsel %vm60_vm2, %v620_v55, 0.0  ;;  %v1906_v63 = vpop.f32.mrf.mxu2 }
 0x137   :  { %v1362_v0 = vpop.eup %1361  ;;  %v637_v1 = vadd.f32 %v636_v59, %v635_v53  ;;  %v422_v12 = vand.u32 2147483647, %v1906_v63  ;;  %v452_v19 = vmul.f32 1.442695, %v431_v10 }
 0x138   :  { %v1364_v3 = vpop.eup %1363  ;;  %v510_v6 = vadd.f32 1.0, %v1362_v0  ;;  %v513_v9 = vmul.f32 -0.5, %v1362_v0  ;;  %v516_v24 = vand.u32 2147483647, %v1362_v0 }
 0x139   :  { %v503_v7 = vmul.f32 0.6931472, %v1364_v3  ;;  %v438_v26 = vsub.f32 0.0, %v422_v12 }
 0x13a   :  { %1365 = vlog2.f32 %v510_v6  ;;  %v1909_v13 = vpop.f32.mrf.mxu0  ;;  %v514_v18 = vadd.f32 1.0, %v513_v9  ;;  %vm517_vm6 = vcmp.lt.f32.partialorder %v516_v24, 0.0004427343 }
 0x13b   :  { %v509_v2 = vsel %vm508_vm5, %v506_v8, %v503_v7  ;;  %v416_v30 = vand.u32 2147483647, %v1909_v13  ;;  %1367 = vpow2.f32 %v452_v19  ;;  %v466_v34 = vmul.f32 1.442695, %v438_v26 }
 0x13c   :  { %v621_v16 = vadd.f32 %v509_v2, %v397_v11  ;;  %v515_v32 = vmul.f32 %v1362_v0, %v514_v18  ;;  %v383_v0 = vmul.f32 %v1891_v50, %v1948_v54  ;;  %v390_v7 = vmul.f32 %v1906_v63, %v93_v57 }
 0x13d   :  { %v432_v21 = vsub.f32 0.0, %v416_v30  ;;  %1369 = vpow2.f32 %v466_v34  ;;  %v368_v8 = vmax.f32 %v1909_v13, 0.0  ;;  %v384_v9 = vmul.f32 %v1909_v13, %v1958_v58 }
 0x13e   :  { %v651_v20 = vsel %vm60_vm2, %v621_v16, 0.0  ;;  %v1921_v27 = vpop.f32.mrf.mxu2  ;;  %v1980_v16 = vld [vmem:[%s2502_s2 + $0x38] sm:$0xff]  ;;  %v399_v13 = vsub.f32 %v367_v60, %v383_v0 }
 0x13f   :  { %v1923_v28 = vadd.f32 %v651_v20, %v650_v15  ;;  %v454_v42 = vmul.f32 1.442695, %v432_v21  ;;  %v423_v43 = vand.u32 2147483647, %v1921_v27  ;;  %v1984_v26 = vsub.f32 %v368_v8, %v384_v9 }
 0x140   :  { %v1366_v29 = vpop.eup %1365 }
 0x141   :  { %v512_v31 = vmul.f32 0.6931472, %v1366_v29  ;;  %v1931_v40 = vpop.eup %1367  ;;  %1371 = vpow2.f32 %v454_v42  ;;  %v439_v48 = vsub.f32 0.0, %v423_v43  ;;  %v94_v29 = vld [vmem:[%s2502_s2 + $0x68] sm:$0xff] }
 0x142   :  { %v1926_v35 = vpop.f32.mrf.mxu0  ;;  %v519_v44 = vadd.f32 1.0, %v1931_v40  ;;  %v522_v56 = vmul.f32 -0.5, %v1931_v40  ;;  %v525_v17 = vand.u32 2147483647, %v1931_v40 }
 0x143   :  { %v518_v36 = vsel %vm517_vm6, %v515_v32, %v512_v31  ;;  %v417_v45 = vand.u32 2147483647, %v1926_v35  ;;  %v1940_v47 = vpop.eup %1369  ;;  %v468_v61 = vmul.f32 1.442695, %v439_v48  ;;  %v369_v30 = vmax.f32 %v1926_v35, 0.0 }
 0x144   :  { %v622_v37 = vadd.f32 %v518_v36, %v398_v33  ;;  %1373 = vlog2.f32 %v519_v44  ;;  %v582_v55 = vadd.f32 1.0, %v1940_v47  ;;  %v523_v11 = vadd.f32 1.0, %v522_v56 }
 0x145   :  { %v433_v51 = vsub.f32 0.0, %v417_v45  ;;  %v585_v2 = vmul.f32 -0.5, %v1940_v47  ;;  %v588_v24 = vand.u32 2147483647, %v1940_v47  ;;  %v385_v33 = vmul.f32 %v1926_v35, %v1980_v16 }
 0x146   :  { %v638_v38 = vsel %vm60_vm2, %v622_v37, 0.0  ;;  %v1929_v39 = vpop.f32.mrf.mxu2  ;;  %1375 = vlog2.f32 %v582_v55  ;;  %v524_v36 = vmul.f32 %v1931_v40, %v523_v11  ;;  %vm1995_vm7 = vcmp.lt.f32.partialorder %v525_v17, 0.0004427343 }
 0x147   :  { %v1933_v41 = vadd.f32 %v638_v38, %v637_v1  ;;  %v1961_v62 = vpop.eup %1371  ;;  %v374_v1 = vmax.f32 %v1906_v63, 0.0  ;;  %v456_v3 = vmul.f32 1.442695, %v433_v51  ;;  %v424_v12 = vand.u32 2147483647, %v1929_v39  ;;  %v2017_v51 = vld [vmem:[%s2502_s2 + $0x40] sm:$0xff] }
 0x148   :  { %v528_v15 = vadd.f32 1.0, %v1961_v62  ;;  %v586_v37 = vadd.f32 1.0, %v585_v2  ;;  %v531_v43 = vmul.f32 -0.5, %v1961_v62  ;;  %v375_v44 = vmax.f32 %v1921_v27, 0.0 }
 0x149   :  { %v406_v23 = vsub.f32 %v374_v1, %v390_v7  ;;  %v440_v31 = vsub.f32 0.0, %v424_v12  ;;  %vm2007_vm8 = vcmp.lt.f32.partialorder %v588_v24, 0.0004427343  ;;  %v534_v1 = vand.u32 2147483647, %v1961_v62 }
 0x14a   :  { %v1938_v46 = vpop.f32.mrf.mxu0  ;;  %v1374_v10 = vpop.eup %1373  ;;  %v587_v0 = vmul.f32 %v1940_v47, %v586_v37  ;;  %v532_v8 = vadd.f32 1.0, %v531_v43 }
 0x14b   :  { %v418_v49 = vand.u32 2147483647, %v1938_v46  ;;  %v521_v20 = vmul.f32 0.6931472, %v1374_v10  ;;  %v2032_v10 = vld [vmem:[%s2502_s2 + $0x70] sm:$0xff]  ;;  %v370_v47 = vmax.f32 %v1938_v46, 0.0 }
 0x14c   :  { %v1376_v34 = vpop.eup %1375  ;;  %vm2043_vm9 = vcmp.lt.f32.partialorder %v534_v1, 0.0004427343  ;;  %v1585_v1 = vmov 0.0  }
 0x14d   :  { %v434_v59 = vsub.f32 0.0, %v418_v49  ;;  %v527_v40 = vsel %vm1995_vm7, %v524_v36, %v521_v20  ;;  %v2012_v49 = vmul.f32 %v1921_v27, %v94_v29  ;;  %v584_v57 = vmul.f32 0.6931472, %v1376_v34  ;;  %61 = vst.msk [vmem:[#allocation2] sm:$0xff] %vm60_vm2, %v1585_v1  ;;  %v2096_v20 = vld [vmem:[%s2502_s2 + $0x48] sm:$0xff] }
 0x14e   :  { %v1943_v53 = vpop.f32.mrf.mxu2  ;;  %v623_v7 = vadd.f32 %v527_v40, %v399_v13  ;;  %62 = vst.msk [vmem:[#allocation3] sm:$0xff] %vm60_vm2, %v1585_v1 }
 0x14f   :  { %v458_v4 = vmul.f32 1.442695, %v434_v59  ;;  %v425_v63 = vand.u32 2147483647, %v1943_v53  ;;  %v470_v59 = vmul.f32 1.442695, %v440_v31  ;;  %v590_v17 = vsel %vm2007_vm8, %v587_v0, %v584_v57 }
 0x150   :  { %v653_v29 = vsel %vm60_vm2, %v623_v7, 0.0  ;;  %v377_v57 = vmax.f32 %v1943_v53, 0.0 }
 0x151   :  { %1377 = vpow2.f32 %v458_v4  ;;  %v441_v21 = vsub.f32 0.0, %v425_v63  ;;  %v2060_v48 = vadd.f32 %v653_v29, %v1923_v28 }
 0x152   :  { %v1966_v6 = vpop.f32.mrf.mxu0  ;;  %1379 = vpow2.f32 %v468_v61  ;;  %v2023_v61 = vsub.f32 %v369_v30, %v385_v33  ;;  %v533_v30 = vmul.f32 %v1961_v62, %v532_v8  ;;  %v630_v33 = vadd.f32 %v590_v17, %v406_v23 }
 0x153   :  { %v419_v50 = vand.u32 2147483647, %v1966_v6  ;;  %1381 = vpow2.f32 %v456_v3  ;;  %v376_v3 = vmax.f32 %v1929_v39, 0.0  ;;  %v472_v4 = vmul.f32 1.442695, %v441_v21 }
 0x154   :  { %1383 = vlog2.f32 %v528_v15  ;;  %v386_v15 = vmul.f32 %v1938_v46, %v2017_v51  ;;  %v2050_v46 = vmul.f32 %v1929_v39, %v2032_v10  ;;  %v2074_v28 = vsel %vm60_vm2, %v630_v33, 0.0 }
 0x155   :  { %v435_v18 = vsub.f32 0.0, %v419_v50  ;;  %v742_v50 = vpop.f32.mrf.mxu3 }
 0x156   :  { %v719_v19 = vpop.f32.mrf.mxu2  ;;  %v402_v21 = vsub.f32 %v370_v47, %v386_v15 }
 0x157   :  { %885 = vmatmul.f32.gmra.mxu1 %v719_v19  ;;  %v460_v32 = vmul.f32 1.442695, %v435_v18  ;;  %v1993_v38 = vpop.eup %1377 }
 0x158   :  { %v2003_v35 = vpop.eup %1379  ;;  %v546_v55 = vadd.f32 1.0, %v1993_v38  ;;  %v549_v18 = vmul.f32 -0.5, %v1993_v38  ;;  %v552_v62 = vand.u32 2147483647, %v1993_v38 }
 0x159   :  { %1385 = vpow2.f32 %v460_v32  ;;  %v2020_v56 = vpop.eup %1381  ;;  %v594_v9 = vmul.f32 -0.5, %v2003_v35  ;;  %v591_v24 = vadd.f32 1.0, %v2003_v35  ;;  %v597_v37 = vand.u32 2147483647, %v2003_v35 }
 0x15a   :  { %v2001_v45 = vpop.f32.mrf.mxu0  ;;  %v1384_v2 = vpop.eup %1383  ;;  %1387 = vlog2.f32 %v546_v55  ;;  %v537_v63 = vadd.f32 1.0, %v2020_v56  ;;  %v550_v42 = vadd.f32 1.0, %v549_v18  ;;  %v540_v0 = vmul.f32 -0.5, %v2020_v56 }
 0x15b   :  { %v420_v60 = vand.u32 2147483647, %v2001_v45  ;;  %1389 = vpow2.f32 %v470_v59  ;;  %v595_v31 = vadd.f32 1.0, %v594_v9  ;;  %v530_v34 = vmul.f32 0.6931472, %v1384_v2  ;;  %v2085_v2 = vld [vmem:[%s2502_s2 + $0x50] sm:$0xff] }
 0x15c   :  { %1391 = vpow2.f32 %v472_v4  ;;  %vm2088_vm10 = vcmp.lt.f32.partialorder %v552_v62, 0.0004427343  ;;  %v541_v29 = vadd.f32 1.0, %v540_v0  ;;  %v388_v33 = vmul.f32 %v2001_v45, %v2085_v2 }
 0x15d   :  { %v436_v11 = vsub.f32 0.0, %v420_v60  ;;  %v2066_v23 = vmul.f32 %v2003_v35, %v595_v31  ;;  %v536_v7 = vsel %vm2043_vm9, %v533_v30, %v530_v34  ;;  %v543_v35 = vand.u32 2147483647, %v2020_v56  ;;  %v745_v15 = vpop.f32.mrf.mxu3 }
 0x15e   :  { %v722_v12 = vpop.f32.mrf.mxu2  ;;  %v372_v31 = vmax.f32 %v2001_v45, 0.0  ;;  %vm2105_vm11 = vcmp.lt.f32.partialorder %v597_v37, 0.0004427343 }
 0x15f   :  { %888 = vmatmul.f32.gmra.mxu1 %v722_v12  ;;  %v2038_v13 = vpop.eup %1385  ;;  %v462_v19 = vmul.f32 1.442695, %v436_v11  ;;  %v551_v11 = vmul.f32 %v1993_v38, %v550_v42  ;;  %v624_v38 = vadd.f32 %v536_v7, %v1984_v26  ;;  %vm2116_vm12 = vcmp.lt.f32.partialorder %v543_v35, 0.0004427343 }
 0x160   :  { %v555_v36 = vadd.f32 1.0, %v2038_v13  ;;  %v1388_v40 = vpop.eup %1387  ;;  %v558_v12 = vmul.f32 -0.5, %v2038_v13  ;;  %v561_v45 = vand.u32 2147483647, %v2038_v13 }
 0x161   :  { %1393 = vpow2.f32 %v462_v19  ;;  %v2063_v55 = vpop.eup %1389  ;;  %v548_v9 = vmul.f32 0.6931472, %v1388_v40  ;;  %v640_v0 = vsel %vm60_vm2, %v624_v38, 0.0 }
 0x162   :  { %v2054_v32 = vpop.f32.mrf.mxu0  ;;  %1395 = vlog2.f32 %v537_v63  ;;  %v2071_v4 = vpop.eup %1391  ;;  %vm2124_vm13 = vcmp.lt.f32.partialorder %v561_v45, 0.0004427343 }
 0x163   :  { %v421_v43 = vand.u32 2147483647, %v2054_v32  ;;  %1397 = vlog2.f32 %v591_v24  ;;  %v371_v24 = vmax.f32 %v1966_v6, 0.0  ;;  %v609_v34 = vadd.f32 1.0, %v2071_v4 }
 0x164   :  { %1399 = vlog2.f32 %v555_v36  ;;  %v554_v26 = vsel %vm2088_vm10, %v551_v11, %v548_v9  ;;  %v559_v36 = vadd.f32 1.0, %v558_v12  ;;  %v765_v9 = vpop.f32.mrf.mxu1  ;;  %v542_v11 = vmul.f32 %v2020_v56, %v541_v29 }
 0x165   :  { %v437_v59 = vsub.f32 0.0, %v421_v43  ;;  %v603_v12 = vmul.f32 -0.5, %v2063_v55  ;;  %v641_v29 = vadd.f32 %v640_v0, %v1933_v41  ;;  %v615_v62 = vand.u32 2147483647, %v2071_v4 }
 0x166   :  { %v788_v60 = vpop.f32.mrf.mxu2  ;;  %v560_v17 = vmul.f32 %v2038_v13, %v559_v36  ;;  %v2136_v13 = vld [vmem:[%s2502_s2 + $0x58] sm:$0xff]  ;;  %v606_v36 = vand.u32 2147483647, %v2063_v55 }
 0x167   :  { %891 = vmatmul.f32.gmra.mxu1 %v742_v50  ;;  %903 = vmatmul.f32.vlgmr.msra.gmra.mxu3 %v788_v60  ;;  %v1394_v8 = vpop.eup %1393  ;;  %v464_v47 = vmul.f32 1.442695, %v437_v59  ;;  %v600_v50 = vadd.f32 1.0, %v2063_v55  ;;  %v387_v59 = vmul.f32 %v1966_v6, %v2096_v20  ;;  %v389_v0 = vmul.f32 %v2054_v32, %v2136_v13 }
 0x168   :  { %v1396_v63 = vpop.eup %1395  ;;  %v564_v18 = vadd.f32 1.0, %v1394_v8  ;;  %v567_v19 = vmul.f32 -0.5, %v1394_v8  ;;  %v570_v60 = vand.u32 2147483647, %v1394_v8  ;;  %vm2158_vm15 = vcmp.lt.f32.partialorder %v606_v36, 0.0004427343 }
 0x169   :  { %1401 = vpow2.f32 %v464_v47  ;;  %v1398_v30 = vpop.eup %1397  ;;  %v539_v43 = vmul.f32 0.6931472, %v1396_v63  ;;  %v626_v47 = vadd.f32 %v554_v26, %v402_v21  ;;  %v404_v63 = vsub.f32 %v372_v31, %v388_v33 }
 0x16a   :  { %1403 = vlog2.f32 %v564_v18  ;;  %v568_v42 = vadd.f32 1.0, %v567_v19  ;;  %v1400_v40 = vpop.eup %1399  ;;  %v2113_v1 = vmul.f32 0.6931472, %v1398_v30  ;;  %vm2128_vm14 = vcmp.lt.f32.partialorder %v570_v60, 0.0004427343 }
 0x16b   :  { %1405 = vlog2.f32 %v600_v50  ;;  %v557_v50 = vmul.f32 0.6931472, %v1400_v40  ;;  %v545_v19 = vsel %vm2116_vm12, %v542_v11, %v539_v43  ;;  %v403_v30 = vsub.f32 %v371_v24, %v387_v59 }
 0x16c   :  { %1407 = vlog2.f32 %v609_v34  ;;  %v569_v18 = vmul.f32 %v1394_v8, %v568_v42  ;;  %v811_v8 = vpop.f32.mrf.mxu3  ;;  %v612_v33 = vmul.f32 -0.5, %v2071_v4  ;;  %v604_v26 = vadd.f32 1.0, %v603_v12 }
 0x16d   :  { %v642_v42 = vsel %vm60_vm2, %v626_v47, 0.0  ;;  %v563_v41 = vsel %vm2124_vm13, %v560_v17, %v557_v50  ;;  %v625_v40 = vadd.f32 %v545_v19, %v2023_v61  ;;  %v373_v60 = vmax.f32 %v2054_v32, 0.0  ;;  %v2156_v47 = vld [vmem:[%s2502_s2 + $0x78] sm:$0xff] }
 0x16e   :  { %v791_v7 = vpop.f32.mrf.mxu2  ;;  %v599_v11 = vsel %vm2105_vm11, %v2066_v23, %v2113_v1  ;;  %v643_v12 = vadd.f32 %v642_v42, %v641_v29  ;;  %v613_v61 = vadd.f32 1.0, %v612_v33  ;;  %v627_v50 = vadd.f32 %v563_v41, %v403_v30 }
 0x16f   :  { %894 = vmatmul.f32.gmra.mxu1 %v745_v15  ;;  %906 = vmatmul.f32.gmra.mxu3 %v791_v7  ;;  %v1402_v6 = vpop.eup %1401  ;;  %v605_v23 = vmul.f32 %v2063_v55, %v604_v26  ;;  %v405_v35 = vsub.f32 %v373_v60, %v389_v0  ;;  %v407_v30 = vsub.f32 %v375_v44, %v2012_v49  ;;  %vm616_vm1 = vcmp.lt.f32.partialorder %v615_v62, 0.0004427343 }
 0x170   :  { %v1404_v56 = vpop.eup %1403  ;;  %v573_v21 = vadd.f32 1.0, %v1402_v6  ;;  %v576_v15 = vmul.f32 -0.5, %v1402_v6  ;;  %v579_v7 = vand.u32 2147483647, %v1402_v6 }
 0x171   :  { %v566_v31 = vmul.f32 0.6931472, %v1404_v56  ;;  %v1406_v34 = vpop.eup %1405  ;;  %v631_v36 = vadd.f32 %v599_v11, %v407_v30 }
 0x172   :  { %1409 = vlog2.f32 %v573_v21  ;;  %v577_v43 = vadd.f32 1.0, %v576_v15  ;;  %v1408_v59 = vpop.eup %1407  ;;  %v602_v37 = vmul.f32 0.6931472, %v1406_v34  ;;  %vm2165_vm0 = vcmp.lt.f32.partialorder %v579_v7, 0.0004427343 }
 0x173   :  { %v572_v24 = vsel %vm2128_vm14, %v569_v18, %v566_v31  ;;  %v768_v18 = vpop.f32.mrf.mxu1  ;;  %v611_v19 = vmul.f32 0.6931472, %v1408_v59  ;;  %v655_v21 = vsel %vm60_vm2, %v625_v40, 0.0  ;;  %v408_v31 = vsub.f32 %v376_v3, %v2050_v46 }
 0x174   :  { %v628_v45 = vadd.f32 %v572_v24, %v404_v63  ;;  %v578_v17 = vmul.f32 %v1402_v6, %v577_v43  ;;  %v608_v15 = vsel %vm2158_vm15, %v605_v23, %v602_v37  ;;  %v614_v6 = vmul.f32 %v2071_v4, %v613_v61  ;;  %v814_v34 = vpop.f32.mrf.mxu3 }
 0x175   :  { %v632_v4 = vadd.f32 %v608_v15, %v408_v31  ;;  %v661_v46 = vsel %vm60_vm2, %v631_v36, 0.0 }
 0x176   :  { %v644_v32 = vsel %vm60_vm2, %v628_v45, 0.0  ;;  %v617_v26 = vsel %vm616_vm1, %v614_v6, %v611_v19  ;;  %v97_v45 = vld [vmem:[#allocation2] sm:$0xff]  ;;  %v857_v11 = vpop.f32.mrf.mxu2 }
 0x177   :  { %897 = vmatmul.f32.gmra.mxu1 %v765_v9  ;;  %909 = vmatmul.f32.gmra.mxu3 %v811_v8  ;;  %v645_v1 = vadd.f32 %v644_v32, %v643_v12  ;;  %v393_v9 = vmul.f32 %v1943_v53, %v2156_v47  ;;  %v657_v8 = vsel %vm60_vm2, %v627_v50, 0.0  ;;  %v648_v41 = vsel %vm60_vm2, %v632_v4, 0.0 }
 0x178   :  { %v1410_v56 = vpop.eup %1409 }
 0x179   :  { %v647_v55 = vadd.f32 %v2074_v28, %v645_v1  ;;  %v575_v29 = vmul.f32 0.6931472, %v1410_v56  ;;  %v656_v28 = vadd.f32 %v655_v21, %v2060_v48  ;;  %v409_v27 = vsub.f32 %v377_v57, %v393_v9 }
 0x17b   :  { %v581_v33 = vsel %vm2165_vm0, %v578_v17, %v575_v29  ;;  %v658_v44 = vadd.f32 %v657_v8, %v656_v28  ;;  %v633_v49 = vadd.f32 %v617_v26, %v409_v27  ;;  %v649_v24 = vadd.f32 %v648_v41, %v647_v55  ;;  %v834_v48 = vpop.f32.mrf.mxu1 }
 0x17c   :  { %v629_v42 = vadd.f32 %v581_v33, %v405_v35 }
 0x17d   :  { %v663_v40 = vsel %vm60_vm2, %v633_v49, 0.0  ;;  %v665_v53 = vsel %vm60_vm2, %v649_v24, 0.0 }
 0x17e   :  { %v659_v39 = vsel %vm60_vm2, %v629_v42, 0.0  ;;  %v860_v12 = vpop.f32.mrf.mxu2 }
 0x17f   :  { %900 = vmatmul.f32.gmra.mxu1 %v768_v18  ;;  %912 = vmatmul.f32.gmra.mxu3 %v814_v34  ;;  %v660_v3 = vadd.f32 %v659_v39, %v658_v44 }
 0x181   :  { %v662_v43 = vadd.f32 %v661_v46, %v660_v3 }
 0x183   :  { %v664_v59 = vadd.f32 %v663_v40, %v662_v43  ;;  %v837_v7 = vpop.f32.mrf.mxu1 }
 0x185   :  { %v666_v57 = vsel %vm60_vm2, %v664_v59, 0.0 }
 0x186   :  { %v667_v60 = vadd.f32 %v666_v57, %v665_v53 }
 0x187   :  { %915 = vmatmul.f32.gmra.mxu3 %v834_v48 }
 0x188   :  { %v668_v0 = vadd.f32 %v667_v60, %v97_v45 }
 0x18a   :  { %669 = vst.msk [vmem:[#allocation2] sm:$0xff] %vm60_vm2, %v668_v0 }
 0x18b   :  { %v880_v61 = vpop.f32.mrf.mxu1 }
 0x18c   :  { %v976_v50 = vand.u32 2147483647, %v880_v61  ;;  %v928_v46 = vmax.f32 %v880_v61, 0.0  ;;  %v944_v41 = vmul.f32 %v880_v61, %v1859_v5 }
 0x18e   :  { %v992_v62 = vsub.f32 0.0, %v976_v50  ;;  %v960_v0 = vsub.f32 %v928_v46, %v944_v41 }
 0x18f   :  { %918 = vmatmul.f32.gmra.mxu3 %v837_v7 }
 0x190   :  { %v1008_v23 = vmul.f32 1.442695, %v992_v62 }
 0x191   :  { %v1238_v37 = vld [vmem:[#allocation2] sm:$0xff] }
 0x192   :  { %1239 = vst.msk [vmem:[#allocation9] sm:$0xff] %vm60_vm2, %v1238_v37  ;;  %1411 = vpow2.f32 %v1008_v23 }
 0x193   :  { %v2199_v63 = vpop.f32.mrf.mxu1  ;;  %1252 = dma.vmem_to_hbm [thread:$0]  %s1248_s22, 128, %s1250_s20, [#allocation6]  }
 0x194   :  { %v977_v1 = vand.u32 2147483647, %v2199_v63 }
 0x196   :  { %v993_v18 = vsub.f32 0.0, %v977_v1  ;;  %v929_v1 = vmax.f32 %v2199_v63, 0.0 }
 0x197   :  { %921 = vmatmul.f32.gmra.mxu3 %v857_v11 }
 0x198   :  { %v1010_v56 = vmul.f32 1.442695, %v993_v18  ;;  %v1412_v38 = vpop.eup %1411  ;;  %v945_v18 = vmul.f32 %v2199_v63, %v1877_v25 }
 0x199   :  { %v1040_v55 = vadd.f32 1.0, %v1412_v38  ;;  %v1043_v31 = vmul.f32 -0.5, %v1412_v38  ;;  %v1046_v39 = vand.u32 2147483647, %v1412_v38 }
 0x19a   :  { %1413 = vpow2.f32 %v1010_v56 }
 0x19b   :  { %1415 = vlog2.f32 %v1040_v55  ;;  %v1044_v36 = vadd.f32 1.0, %v1043_v31  ;;  %vm2225_vm3 = vcmp.lt.f32.partialorder %v1046_v39, 0.0004427343 }
 0x19d   :  { %v1045_v24 = vmul.f32 %v1412_v38, %v1044_v36 }
 0x19f   :  { %924 = vmatmul.f32.gmra.mxu3 %v860_v12 }
 0x1a0   :  { %v1414_v34 = vpop.eup %1413 }
 0x1a1   :  { %v1049_v4 = vadd.f32 1.0, %v1414_v34  ;;  %v1416_v44 = vpop.eup %1415  ;;  %v1052_v59 = vmul.f32 -0.5, %v1414_v34  ;;  %v1055_v61 = vand.u32 2147483647, %v1414_v34 }
 0x1a2   :  { %v1042_v40 = vmul.f32 0.6931472, %v1416_v44 }
 0x1a3   :  { %v1053_v37 = vadd.f32 1.0, %v1052_v59  ;;  %vm2250_vm4 = vcmp.lt.f32.partialorder %v1055_v61, 0.0004427343 }
 0x1a4   :  { %v1048_v11 = vsel %vm2225_vm3, %v1045_v24, %v1042_v40 }
 0x1a5   :  { %v1184_v56 = vadd.f32 %v1048_v11, %v960_v0 }
 0x1d4   :  { %v2201_v32 = vpop.f32.mrf.mxu1 }
 0x1d5   :  { %v978_v19 = vand.u32 2147483647, %v2201_v32  ;;  %v930_v55 = vmax.f32 %v2201_v32, 0.0 }
 0x1d7   :  { %v994_v21 = vsub.f32 0.0, %v978_v19 }
 0x1d9   :  { %v1012_v29 = vmul.f32 1.442695, %v994_v21 }
 0x1db   :  { %1417 = vpow2.f32 %v1012_v29  ;;  %v946_v29 = vmul.f32 %v2201_v32, %v1871_v22  ;;  %v2263_v32 = vsel %vm60_vm2, %v1184_v56, 0.0 }
 0x1dc   :  { %v2204_v17 = vpop.f32.mrf.mxu1 }
 0x1dd   :  { %v979_v28 = vand.u32 2147483647, %v2204_v17  ;;  %v931_v39 = vmax.f32 %v2204_v17, 0.0  ;;  %v2274_v46 = vmul.f32 %v2204_v17, %v1896_v52 }
 0x1df   :  { %v995_v42 = vsub.f32 0.0, %v979_v28 }
 0x1e1   :  { %v2218_v3 = vpop.eup %1417  ;;  %v1014_v45 = vmul.f32 1.442695, %v995_v42 }
 0x1e2   :  { %v1058_v57 = vadd.f32 1.0, %v2218_v3  ;;  %v1061_v38 = vmul.f32 -0.5, %v2218_v3 }
 0x1e4   :  { %v2207_v35 = vpop.f32.mrf.mxu1 }
 0x1e5   :  { %v980_v9 = vand.u32 2147483647, %v2207_v35  ;;  %v932_v36 = vmax.f32 %v2207_v35, 0.0  ;;  %v948_v22 = vmul.f32 %v2207_v35, %v1914_v14 }
 0x1e7   :  { %v996_v15 = vsub.f32 0.0, %v980_v9  ;;  %v964_v52 = vsub.f32 %v932_v36, %v948_v22 }
 0x1e9   :  { %v1016_v30 = vmul.f32 1.442695, %v996_v15  ;;  %v2245_v15 = vmul.f32 %v1414_v34, %v1053_v37  ;;  %v1062_v34 = vadd.f32 1.0, %v1061_v38 }
 0x1ea   :  { %v2210_v6 = vpop.f32.mrf.mxu3 }
 0x1eb   :  { %v984_v8 = vand.u32 2147483647, %v2210_v6  ;;  %1419 = vpow2.f32 %v1016_v30  ;;  %v936_v38 = vmax.f32 %v2210_v6, 0.0 }
 0x1ec   :  { %v2213_v33 = vpop.f32.mrf.mxu1  ;;  %1421 = vlog2.f32 %v1049_v4  ;;  %v2265_v4 = vsub.f32 %v929_v1, %v945_v18 }
 0x1ed   :  { %v1000_v26 = vsub.f32 0.0, %v984_v8  ;;  %v981_v60 = vand.u32 2147483647, %v2213_v33  ;;  %v949_v17 = vmul.f32 %v2213_v33, %v1948_v54 }
 0x1ef   :  { %v1024_v27 = vmul.f32 1.442695, %v1000_v26  ;;  %v997_v19 = vsub.f32 0.0, %v981_v60  ;;  %v1064_v26 = vand.u32 2147483647, %v2218_v3 }
 0x1f1   :  { %v2223_v43 = vpop.eup %1419  ;;  %1423 = vpow2.f32 %v1024_v27  ;;  %v1018_v8 = vmul.f32 1.442695, %v997_v19  ;;  %v962_v27 = vsub.f32 %v930_v55, %v946_v29  ;;  %vm2283_vm5 = vcmp.lt.f32.partialorder %v1064_v26, 0.0004427343 }
 0x1f2   :  { %v2216_v49 = vpop.f32.mrf.mxu3  ;;  %v1076_v7 = vadd.f32 1.0, %v2223_v43  ;;  %1425 = vpow2.f32 %v1014_v45  ;;  %v1422_v12 = vpop.eup %1421  ;;  %v1079_v31 = vmul.f32 -0.5, %v2223_v43  ;;  %v1063_v45 = vmul.f32 %v2218_v3, %v1062_v34 }
 0x1f3   :  { %1427 = vlog2.f32 %v1058_v57  ;;  %v2243_v9 = vmul.f32 0.6931472, %v1422_v12  ;;  %v985_v14 = vand.u32 2147483647, %v2216_v49  ;;  %v1082_v57 = vand.u32 2147483647, %v2223_v43 }
 0x1f4   :  { %v2221_v48 = vpop.f32.mrf.mxu1  ;;  %1429 = vlog2.f32 %v1076_v7  ;;  %v1080_v40 = vadd.f32 1.0, %v1079_v31 }
 0x1f5   :  { %v982_v5 = vand.u32 2147483647, %v2221_v48  ;;  %v1057_v42 = vsel %vm2250_vm4, %v2245_v15, %v2243_v9  ;;  %v1001_v12 = vsub.f32 0.0, %v985_v14  ;;  %vm2296_vm6 = vcmp.lt.f32.partialorder %v1082_v57, 0.0004427343 }
 0x1f6   :  { %v1081_v1 = vmul.f32 %v2223_v43, %v1080_v40  ;;  %v933_v15 = vmax.f32 %v2213_v33, 0.0 }
 0x1f7   :  { %v998_v50 = vsub.f32 0.0, %v982_v5  ;;  %v2237_v23 = vpop.eup %1423  ;;  %v1026_v34 = vmul.f32 1.442695, %v1001_v12 }
 0x1f8   :  { %v1112_v25 = vadd.f32 1.0, %v2237_v23  ;;  %v2255_v63 = vpop.eup %1425  ;;  %v1115_v7 = vmul.f32 -0.5, %v2237_v23  ;;  %v965_v33 = vsub.f32 %v933_v15, %v949_v17 }
 0x1f9   :  { %v1020_v21 = vmul.f32 1.442695, %v998_v50  ;;  %v1428_v28 = vpop.eup %1427  ;;  %v1067_v24 = vadd.f32 1.0, %v2255_v63  ;;  %v1070_v5 = vmul.f32 -0.5, %v2255_v63  ;;  %v1073_v37 = vand.u32 2147483647, %v2255_v63 }
 0x1fa   :  { %v2235_v62 = vpop.f32.mrf.mxu3  ;;  %v1430_v44 = vpop.eup %1429  ;;  %v1060_v41 = vmul.f32 0.6931472, %v1428_v28  ;;  %v1116_v31 = vadd.f32 1.0, %v1115_v7  ;;  %v1118_v28 = vand.u32 2147483647, %v2237_v23 }
 0x1fb   :  { %1431 = vpow2.f32 %v1020_v21  ;;  %v1078_v0 = vmul.f32 0.6931472, %v1430_v44  ;;  %v986_v11 = vand.u32 2147483647, %v2235_v62  ;;  %v952_v21 = vmul.f32 %v2210_v6, %v2017_v51 }
 0x1fc   :  { %1433 = vlog2.f32 %v1112_v25  ;;  %v2280_v59 = vpop.f32.mrf.mxu1  ;;  %v1066_v50 = vsel %vm2283_vm5, %v1063_v45, %v1060_v41  ;;  %v1071_v29 = vadd.f32 1.0, %v1070_v5  ;;  %v934_v44 = vmax.f32 %v2221_v48, 0.0 }
 0x1fd   :  { %1435 = vpow2.f32 %v1018_v8  ;;  %v983_v3 = vand.u32 2147483647, %v2280_v59  ;;  %v1084_v25 = vsel %vm2296_vm6, %v1081_v1, %v1078_v0  ;;  %v1002_v43 = vsub.f32 0.0, %v986_v11 }
 0x1fe   :  { %1437 = vlog2.f32 %v1067_v24  ;;  %v1186_v8 = vadd.f32 %v1066_v50, %v962_v27  ;;  %v1188_v14 = vadd.f32 %v1084_v25, %v964_v52  ;;  %v950_v24 = vmul.f32 %v2221_v48, %v1958_v58 }
 0x1ff   :  { %v999_v26 = vsub.f32 0.0, %v983_v3  ;;  %v968_v45 = vsub.f32 %v936_v38, %v952_v21  ;;  %v1117_v53 = vmul.f32 %v2237_v23, %v1116_v31  ;;  %v1028_v57 = vmul.f32 1.442695, %v1002_v43 }
 0x200   :  { %v1201_v7 = vsel %vm60_vm2, %v1186_v8, 0.0  ;;  %vm2318_vm7 = vcmp.lt.f32.partialorder %v1118_v28, 0.0004427343  ;;  %v1203_v23 = vsel %vm60_vm2, %v1188_v14, 0.0  ;;  %v966_v3 = vsub.f32 %v934_v44, %v950_v24 }
 0x201   :  { %v1432_v60 = vpop.eup %1431  ;;  %v1022_v52 = vmul.f32 1.442695, %v999_v26  ;;  %v1202_v50 = vadd.f32 %v1201_v7, %v2263_v32  ;;  %v1072_v8 = vmul.f32 %v2255_v63, %v1071_v29  ;;  %v1185_v26 = vadd.f32 %v1057_v42, %v2265_v4 }
 0x202   :  { %v2277_v35 = vpop.f32.mrf.mxu3  ;;  %v1094_v61 = vadd.f32 1.0, %v1432_v60  ;;  %v1097_v18 = vmul.f32 -0.5, %v1432_v60  ;;  %v1434_v19 = vpop.eup %1433  ;;  %v1100_v40 = vand.u32 2147483647, %v1432_v60  ;;  %vm2342_vm9 = vcmp.lt.f32.partialorder %v1073_v37, 0.0004427343 }
 0x203   :  { %v2303_v55 = vpop.eup %1435  ;;  %v1114_v22 = vmul.f32 0.6931472, %v1434_v19  ;;  %v987_v6 = vand.u32 2147483647, %v2277_v35  ;;  %v1204_v25 = vadd.f32 %v1203_v23, %v1202_v50  ;;  %v1215_v24 = vsel %vm60_vm2, %v1185_v26, 0.0 }
 0x204   :  { %1439 = vlog2.f32 %v1094_v61  ;;  %v1098_v51 = vadd.f32 1.0, %v1097_v18  ;;  %v1085_v41 = vadd.f32 1.0, %v2303_v55  ;;  %v1438_v27 = vpop.eup %1437  ;;  %vm1101_vm8 = vcmp.lt.f32.partialorder %v1100_v40, 0.0004427343 }
 0x205   :  { %1441 = vpow2.f32 %v1026_v34  ;;  %v1120_v58 = vsel %vm2318_vm7, %v1117_v53, %v1114_v22  ;;  %v1003_v61 = vsub.f32 0.0, %v987_v6  ;;  %v1069_v19 = vmul.f32 0.6931472, %v1438_v27 }
 0x206   :  { %v1099_v12 = vmul.f32 %v1432_v60, %v1098_v51  ;;  %1443 = vlog2.f32 %v1085_v41  ;;  %v1192_v56 = vadd.f32 %v1120_v58, %v968_v45  ;;  %v1088_v28 = vmul.f32 -0.5, %v2303_v55 }
 0x207   :  { %1445 = vpow2.f32 %v1028_v57  ;;  %v1030_v31 = vmul.f32 1.442695, %v1003_v61  ;;  %v963_v51 = vsub.f32 %v931_v39, %v2274_v46  ;;  %v1075_v6 = vsel %vm2342_vm9, %v1072_v8, %v1069_v19 }
 0x208   :  { %1447 = vpow2.f32 %v1022_v52  ;;  %v1207_v30 = vsel %vm60_vm2, %v1192_v56, 0.0  ;;  %v1089_v39 = vadd.f32 1.0, %v1088_v28  ;;  %v1091_v41 = vand.u32 2147483647, %v2303_v55 }
 0x209   :  { %1449 = vpow2.f32 %v1030_v31  ;;  %v1187_v37 = vadd.f32 %v1075_v6, %v963_v51  ;;  %v953_v7 = vmul.f32 %v2216_v49, %v2096_v20  ;;  %v935_v20 = vmax.f32 %v2280_v59, 0.0 }
 0x20a   :  { %v2308_v36 = vpop.f32.mrf.mxu3  ;;  %v1440_v0 = vpop.eup %1439  ;;  %vm2377_vm10 = vcmp.lt.f32.partialorder %v1091_v41, 0.0004427343  ;;  %v951_v50 = vmul.f32 %v2280_v59, %v1980_v16 }
 0x20b   :  { %v988_v5 = vand.u32 2147483647, %v2308_v36  ;;  %v1096_v48 = vmul.f32 0.6931472, %v1440_v0  ;;  %v2329_v43 = vpop.eup %1441  ;;  %v937_v0 = vmax.f32 %v2216_v49, 0.0  ;;  %v1216_v52 = vsel %vm60_vm2, %v1187_v37, 0.0 }
 0x20c   :  { %v1444_v29 = vpop.eup %1443  ;;  %v1121_v63 = vadd.f32 1.0, %v2329_v43  ;;  %v1124_v53 = vmul.f32 -0.5, %v2329_v43  ;;  %v2402_v16 = vadd.f32 %v1216_v52, %v1215_v24  ;;  %v940_v15 = vmax.f32 %v2308_v36, 0.0 }
 0x20d   :  { %v1102_v1 = vsel %vm1101_vm8, %v1099_v12, %v1096_v48  ;;  %v1004_v18 = vsub.f32 0.0, %v988_v5  ;;  %v2352_v9 = vpop.eup %1445  ;;  %v1087_v40 = vmul.f32 0.6931472, %v1444_v29  ;;  %v1090_v5 = vmul.f32 %v2303_v55, %v1089_v39 }
 0x20e   :  { %v1190_v38 = vadd.f32 %v1102_v1, %v966_v3  ;;  %v2358_v42 = vpop.eup %1447  ;;  %v1130_v27 = vadd.f32 1.0, %v2352_v9  ;;  %v938_v48 = vmax.f32 %v2235_v62, 0.0  ;;  %v954_v12 = vmul.f32 %v2235_v62, %v2085_v2 }
 0x20f   :  { %v1032_v34 = vmul.f32 1.442695, %v1004_v18  ;;  %v1103_v57 = vadd.f32 1.0, %v2358_v42  ;;  %v2374_v11 = vpop.eup %1449  ;;  %v1093_v55 = vsel %vm2377_vm10, %v1090_v5, %v1087_v40  ;;  %v1125_v23 = vadd.f32 1.0, %v1124_v53 }
 0x210   :  { %v1205_v32 = vsel %vm60_vm2, %v1190_v38, 0.0  ;;  %v1127_v3 = vand.u32 2147483647, %v2329_v43  ;;  %v939_v2 = vmax.f32 %v2277_v35, 0.0  ;;  %v955_v62 = vmul.f32 %v2277_v35, %v2136_v13 }
 0x211   :  { %v1206_v44 = vadd.f32 %v1205_v32, %v1204_v25  ;;  %1451 = vpow2.f32 %v1032_v34  ;;  %v1139_v18 = vadd.f32 1.0, %v2374_v11  ;;  %v1189_v38 = vadd.f32 %v1093_v55, %v965_v33 }
 0x212   :  { %v2326_v21 = vpop.f32.mrf.mxu3  ;;  %v2398_v25 = vsub.f32 %v937_v0, %v953_v7  ;;  %v1133_v31 = vmul.f32 -0.5, %v2352_v9  ;;  %v970_v59 = vsub.f32 %v938_v48, %v954_v12  ;;  %v1106_v8 = vmul.f32 -0.5, %v2358_v42 }
 0x213   :  { %v989_v60 = vand.u32 2147483647, %v2326_v21  ;;  %v2356_v4 = vadd.f32 %v1207_v30, %v1206_v44  ;;  %v2408_v13 = vmul.f32 %v2329_v43, %v1125_v23  ;;  %vm2410_vm11 = vcmp.lt.f32.partialorder %v1127_v3, 0.0004427343 }
 0x214   :  { %v967_v32 = vsub.f32 %v935_v20, %v951_v50  ;;  %v2417_v44 = vsub.f32 %v939_v2, %v955_v62  ;;  %v2421_v6 = vsel %vm60_vm2, %v1189_v38, 0.0  ;;  %v1134_v43 = vadd.f32 1.0, %v1133_v31  ;;  %v1476_v62 = vld [vmem:[%s2502_s2 + $0x68] sm:$0xff] }
 0x215   :  { %v1005_v14 = vsub.f32 0.0, %v989_v60  ;;  %v1136_v30 = vand.u32 2147483647, %v2352_v9  ;;  %v1109_v37 = vand.u32 2147483647, %v2358_v42  ;;  %v1142_v41 = vmul.f32 -0.5, %v2374_v11 }
 0x216   :  { %v1145_v52 = vand.u32 2147483647, %v2374_v11 }
 0x217   :  { %v1034_v46 = vmul.f32 1.442695, %v1005_v14  ;;  %v2384_v61 = vpop.eup %1451  ;;  %v1107_v14 = vadd.f32 1.0, %v1106_v8  ;;  %vm2437_vm12 = vcmp.lt.f32.partialorder %v1136_v30, 0.0004427343  ;;  %v1143_v55 = vadd.f32 1.0, %v1142_v41 }
 0x218   :  { %v1148_v60 = vadd.f32 1.0, %v2384_v61  ;;  %v1151_v53 = vmul.f32 -0.5, %v2384_v61  ;;  %vm2446_vm13 = vcmp.lt.f32.partialorder %v1109_v37, 0.0004427343  ;;  %v1154_v2 = vand.u32 2147483647, %v2384_v61 }
 0x219   :  { %1453 = vpow2.f32 %v1034_v46  ;;  %v1108_v7 = vmul.f32 %v2358_v42, %v1107_v14  ;;  %v941_v42 = vmax.f32 %v2326_v21, 0.0  ;;  %vm2458_vm14 = vcmp.lt.f32.partialorder %v1145_v52, 0.0004427343 }
 0x21a   :  { %v2365_v45 = vpop.f32.mrf.mxu3  ;;  %1455 = vlog2.f32 %v1121_v63  ;;  %v1475_v63 = vld [vmem:[%s2502_s2 + $0x60] sm:$0xff]  ;;  %v1152_v23 = vadd.f32 1.0, %v1151_v53  ;;  %vm2470_vm15 = vcmp.lt.f32.partialorder %v1154_v2, 0.0004427343  ;;  %s1587_s2 = smov [#allocation10]  }
 0x21b   :  { %v990_v54 = vand.u32 2147483647, %v2365_v45  ;;  %1457 = vlog2.f32 %v1130_v27  ;;  %v956_v17 = vmul.f32 %v1475_v63, %v2308_v36  ;;  %s1258_s26 = sshll.u32 %s1587_s2, 4  ;;  %s1259_s26 = int_to_ptr.vmem [resolvable:$true] %s1258_s26 }
 0x21c   :  { %1459 = vlog2.f32 %v1103_v57 }
 0x21d   :  { %v1006_v49 = vsub.f32 0.0, %v990_v54  ;;  %v1135_v54 = vmul.f32 %v2352_v9, %v1134_v43 }
 0x21f   :  { %v2392_v1 = vpop.eup %1453  ;;  %v1036_v19 = vmul.f32 1.442695, %v1006_v49  ;;  %v972_v49 = vsub.f32 %v940_v15, %v956_v17 }
 0x220   :  { %v1456_v56 = vpop.eup %1455  ;;  %v1157_v34 = vadd.f32 1.0, %v2392_v1  ;;  %v1160_v33 = vmul.f32 -0.5, %v2392_v1  ;;  %v1163_v35 = vand.u32 2147483647, %v2392_v1 }
 0x221   :  { %1461 = vpow2.f32 %v1036_v19  ;;  %v1458_v26 = vpop.eup %1457  ;;  %v2415_v22 = vmul.f32 0.6931472, %v1456_v56 }
 0x222   :  { %v2405_v28 = vpop.f32.mrf.mxu3  ;;  %1463 = vlog2.f32 %v1139_v18  ;;  %v1460_v51 = vpop.eup %1459  ;;  %v1132_v46 = vmul.f32 0.6931472, %v1458_v26  ;;  %v957_v18 = vmul.f32 %v1476_v62, %v2326_v21  ;;  %v1161_v19 = vadd.f32 1.0, %v1160_v33 }
 0x223   :  { %v991_v29 = vand.u32 2147483647, %v2405_v28  ;;  %1465 = vlog2.f32 %v1148_v60  ;;  %v1129_v40 = vsel %vm2410_vm11, %v2408_v13, %v2415_v22  ;;  %v1105_v27 = vmul.f32 0.6931472, %v1460_v51 }
 0x224   :  { %1467 = vlog2.f32 %v1157_v34  ;;  %v1138_v12 = vsel %vm2437_vm12, %v1135_v54, %v1132_v46  ;;  %v1144_v13 = vmul.f32 %v2374_v11, %v1143_v55  ;;  %v1153_v22 = vmul.f32 %v2384_v61, %v1152_v23 }
 0x225   :  { %v1007_v39 = vsub.f32 0.0, %v991_v29  ;;  %v1111_v20 = vsel %vm2446_vm13, %v1108_v7, %v1105_v27  ;;  %v1194_v56 = vadd.f32 %v1138_v12, %v970_v59  ;;  %v942_v21 = vmax.f32 %v2365_v45, 0.0 }
 0x226   :  { %v1191_v8 = vadd.f32 %v1111_v20, %v967_v32  ;;  %v958_v59 = vmul.f32 %v2365_v45, %v2032_v10  ;;  %v1162_v11 = vmul.f32 %v2392_v1, %v1161_v19  ;;  %vm1164_vm0 = vcmp.lt.f32.partialorder %v1163_v35, 0.0004427343 }
 0x227   :  { %v1462_v24 = vpop.eup %1461  ;;  %v1038_v57 = vmul.f32 1.442695, %v1007_v39  ;;  %v1219_v10 = vadd.f32 %v2421_v6, %v2402_v16  ;;  %v1193_v45 = vadd.f32 %v1129_v40, %v2398_v25  ;;  %v973_v41 = vsub.f32 %v941_v42, %v957_v18 }
 0x228   :  { %v1166_v5 = vadd.f32 1.0, %v1462_v24  ;;  %v1464_v0 = vpop.eup %1463  ;;  %v1169_v58 = vmul.f32 -0.5, %v1462_v24  ;;  %v1172_v34 = vand.u32 2147483647, %v1462_v24  ;;  %v1220_v17 = vsel %vm60_vm2, %v1191_v8, 0.0 }
 0x229   :  { %1469 = vpow2.f32 %v1038_v57  ;;  %v1466_v48 = vpop.eup %1465  ;;  %v1141_v50 = vmul.f32 0.6931472, %v1464_v0  ;;  %v974_v27 = vsub.f32 %v942_v21, %v958_v59  ;;  %v1221_v53 = vadd.f32 %v1220_v17, %v1219_v10 }
 0x22a   :  { %1471 = vlog2.f32 %v1166_v5  ;;  %v1468_v3 = vpop.eup %1467  ;;  %v1150_v31 = vmul.f32 0.6931472, %v1466_v48  ;;  %v1170_v60 = vadd.f32 1.0, %v1169_v58  ;;  %vm1173_vm1 = vcmp.lt.f32.partialorder %v1172_v34, 0.0004427343 }
 0x22b   :  { %v1159_v29 = vmul.f32 0.6931472, %v1468_v3  ;;  %v1147_v43 = vsel %vm2458_vm14, %v1144_v13, %v1141_v50  ;;  %v943_v57 = vmax.f32 %v2405_v28, 0.0  ;;  %v959_v16 = vmul.f32 %v2405_v28, %v2156_v47  ;;  %v670_v50 = vld [vmem:[#allocation3] sm:$0xff] }
 0x22c   :  { %v1156_v61 = vsel %vm2470_vm15, %v1153_v22, %v1150_v31  ;;  %v1171_v15 = vmul.f32 %v1462_v24, %v1170_v60  ;;  %v1195_v1 = vadd.f32 %v1147_v43, %v2417_v44  ;;  %v1209_v24 = vsel %vm60_vm2, %v1194_v56, 0.0 }
 0x22d   :  { %v1165_v39 = vsel %vm1164_vm0, %v1162_v11, %v1159_v29  ;;  %v1196_v37 = vadd.f32 %v1156_v61, %v972_v49  ;;  %v1222_v40 = vsel %vm60_vm2, %v1193_v45, 0.0  ;;  %v1210_v0 = vadd.f32 %v1209_v24, %v2356_v4 }
 0x22e   :  { %v1197_v36 = vadd.f32 %v1165_v39, %v973_v41  ;;  %v1224_v44 = vsel %vm60_vm2, %v1195_v1, 0.0  ;;  %v1223_v7 = vadd.f32 %v1222_v40, %v1221_v53  ;;  %v975_v9 = vsub.f32 %v943_v57, %v959_v16 }
 0x22f   :  { %v1470_v26 = vpop.eup %1469  ;;  %v1211_v5 = vsel %vm60_vm2, %v1196_v37, 0.0 }
 0x230   :  { %v1472_v51 = vpop.eup %1471  ;;  %v1175_v30 = vadd.f32 1.0, %v1470_v26  ;;  %v1178_v63 = vmul.f32 -0.5, %v1470_v26  ;;  %v1181_v6 = vand.u32 2147483647, %v1470_v26  ;;  %v1226_v48 = vsel %vm60_vm2, %v1197_v36, 0.0 }
 0x231   :  { %v1168_v14 = vmul.f32 0.6931472, %v1472_v51  ;;  %v1225_v47 = vadd.f32 %v1224_v44, %v1223_v7  ;;  %v1212_v28 = vadd.f32 %v1211_v5, %v1210_v0 }
 0x232   :  { %1473 = vlog2.f32 %v1175_v30  ;;  %v1179_v54 = vadd.f32 1.0, %v1178_v63  ;;  %vm1182_vm3 = vcmp.lt.f32.partialorder %v1181_v6, 0.0004427343 }
 0x233   :  { %v1174_v46 = vsel %vm1173_vm1, %v1171_v15, %v1168_v14  ;;  %v1227_v49 = vadd.f32 %v1226_v48, %v1225_v47 }
 0x234   :  { %v1198_v33 = vadd.f32 %v1174_v46, %v974_v27  ;;  %v1180_v58 = vmul.f32 %v1470_v26, %v1179_v54 }
 0x236   :  { %v1213_v12 = vsel %vm60_vm2, %v1198_v33, 0.0 }
 0x237   :  { %v1214_v23 = vadd.f32 %v1213_v12, %v1212_v28 }
 0x238   :  { %v1474_v25 = vpop.eup %1473 }
 0x239   :  { %v1177_v52 = vmul.f32 0.6931472, %v1474_v25  ;;  %v1230_v4 = vsel %vm60_vm2, %v1214_v23, 0.0 }
 0x23b   :  { %v1183_v55 = vsel %vm1182_vm3, %v1180_v58, %v1177_v52 }
 0x23c   :  { %v1199_v20 = vadd.f32 %v1183_v55, %v975_v9 }
 0x23e   :  { %v1228_v42 = vsel %vm60_vm2, %v1199_v20, 0.0 }
 0x23f   :  { %v1229_v3 = vadd.f32 %v1228_v42, %v1227_v49 }
 0x241   :  { %v1231_v2 = vsel %vm60_vm2, %v1229_v3, 0.0 }
 0x242   :  { %v1232_v62 = vadd.f32 %v1231_v2, %v1230_v4 }
 0x244   :  { %v1233_v18 = vadd.f32 %v1232_v62, %v670_v50 }
 0x246   :  { %1234 = vst.msk [vmem:[#allocation3] sm:$0xff] %vm60_vm2, %v1233_v18 }
 0x24d   :  { %v1240_v19 = vld [vmem:[#allocation3] sm:$0xff] }
 0x24e   :  { %1241 = vst.msk [vmem:[#allocation10] sm:$0xff] %vm60_vm2, %v1240_v19 }
 0x24f   :  { %1263 = dma.vmem_to_hbm [thread:$0]  %s1259_s26, 128, %s1261_s29, [#allocation11]  }
 0x250   :  { %1577 = dma.done.wait [#allocation6], 128  }
 0x251   :  { %1578 = vsyncadd [#allocation6], 4294967168 }
 0x252   :  { %1579 = dma.done.wait [#allocation11], 128  }
 0x253   :  { %1580 = vsyncadd [#allocation11], 4294967168 }
 0x254   :  { %1272 = vsyncpa [#allocation5], 1 }
 0x255   :  { %1273 = vsyncpa [#allocation8], 1 }
 0x256   :  { %1274 = vsyncpa [#allocation6], 1 }
 0x257   :  { %1275 = vsyncpa [#allocation11], 1 }

</bundles_post_ra>
